<compile_context>
chip_gen: v7x
topology: tpu7x:2x2x1
jax: 0.10.0
libtpu: 0.0.40
codegen_flags: <defaults>
</compile_context>

<pallas_src>
import jax
import jax.numpy as jnp
from jax.experimental import pallas as pl
from jax.experimental.pallas import tpu as pltpu

HIGHEST = jax.lax.Precision.HIGHEST


def _dot(a, b):
    # Single-pass bf16 MXU, f32 accumulation.
    return jnp.dot(a.astype(jnp.bfloat16), b, preferred_element_type=jnp.float32)


def decoder_kernel(trg_ref, enc_ref, mask_ref, projk_ref, h0_ref,
                   w_h_ref, w_ctx_ref, energy_ref, b_hh_ref,
                   dec_ref, pre_ref, hid_ref):
    T = trg_ref.shape[0]
    H = h0_ref.shape[1]

    # ---- loop-invariant loads (kept un-broadcast; rely on implicit bcast) ----
    enc = enc_ref[...]            # (B, S, 2H) f32
    projk = projk_ref[...]        # (B, S, H)  f32
    keep = mask_ref[...] > 0.0    # (B, S)
    v = energy_ref[...]           # (1, 1, H)  f32
    w_h = w_h_ref[...]            # (H, 5H)  bf16  [query | w_hh | w_pre_h]
    w_ctx = w_ctx_ref[...]        # (2H, 4H) bf16  [w_ih_ctx | w_pre_ctx]
    b_hh = b_hh_ref[...]          # (1, 3H)  f32

    h = h0_ref[...]               # (B, H) f32
    pre_pending = None            # deferred (prev, ctx) part of previous step's pre-output

    # T is small and the recurrence is inherently serial: full static unroll.
    for t in range(T):
        trg_t = trg_ref[t]                         # (B, 4H): [:3H]=prev@w_ih+b_ih, [3H:]=prev@w_pre

        # Single fused h-matmul: attention query | GRU hidden gates | prev step's pre h-term.
        hf = _dot(h, w_h)                          # (B, 5H)
        q = hf[:, :H]
        gh = hf[:, H:4 * H] + b_hh                 # (B, 3H)

        if t > 0:   # complete step t-1's pre-output with h_t @ w_pre_h
            pre_ref[:, t - 1:t, :] = (pre_pending + hf[:, 4 * H:])[:, None, :]

        # --- Bahdanau attention (|scores| <= sum|v| = O(1): max-subtraction skipped) ---
        tt = jnp.tanh(projk + q[:, None, :])       # (B, S, H)
        scores = jnp.sum(tt * v, axis=-1)          # (B, S)   VPU mul + XLU reduce
        e = jnp.where(keep, jnp.exp(scores), 0.0)
        inv = pl.reciprocal(jnp.sum(e, axis=-1, keepdims=True), approx=True)
        alphas = e * inv                           # (B, S)
        ctx = jnp.sum(alphas[:, :, None] * enc, axis=1)    # (B, 2H) — VPU/XLU, no M=1 MXU tile

        # --- fused ctx matmul feeding both GRU gates and pre-output ---
        cf = _dot(ctx, w_ctx)                      # (B, 4H)
        gx = trg_t[:, :3 * H] + cf[:, :3 * H]      # (B, 3H)  (b_ih already folded in)

        # --- GRU cell, PyTorch gate order (r, z, n) ---
        r = jax.nn.sigmoid(gx[:, :H] + gh[:, :H])
        z = jax.nn.sigmoid(gx[:, H:2 * H] + gh[:, H:2 * H])
        n = jnp.tanh(gx[:, 2 * H:] + r * gh[:, 2 * H:])
        h = (1.0 - z) * n + z * h                  # (B, H)

        dec_ref[:, t:t + 1, :] = h[:, None, :]
        # Dropout is identity in eval mode; stash the non-h part of this step's pre.
        pre_pending = trg_t[:, 3 * H:] + cf[:, 3 * H:]

    # Final step's pre-output h-term (one trailing (B,H)x(H,H) matmul).
    pre_last = pre_pending + _dot(h, w_h[:, 4 * H:])
    pre_ref[:, T - 1:T, :] = pre_last[:, None, :]
    hid_ref[...] = h[None]


@jax.jit
def decoder_forward(trg_embed, encoder_hidden, encoder_final, src_mask, params):
    B, T, E = trg_embed.shape
    _, S, H2 = encoder_hidden.shape
    H = H2 // 2

    # One-time work hoisted out of the kernel (bridge + proj_key).
    h0 = jnp.tanh(encoder_final @ params["bridge_wt"] + params["bridge_b"])      # (B, H)
    proj_key = jnp.einsum("bsk,kh->bsh", encoder_hidden, params["key_wt"])       # (B, S, H)

    # All trg-dependent matmuls as one GEMM with b_ih folded in; emitted in
    # (T, B, 4H) so the kernel reads trg_ref[t] per step (no separate transpose op).
    w_trg = jnp.concatenate([params["w_ih_t"][:E], params["w_pre_t"][:E]], axis=1)     # (E, 4H)
    b_trg = jnp.concatenate([params["b_ih"], jnp.zeros((1, H), jnp.float32)], axis=1)  # (1, 4H)
    trg_fused = jnp.einsum("bte,ef->tbf", trg_embed, w_trg) + b_trg                    # (T, B, 4H)

    # Fused recurrent-side weights; bf16 for the MXU-only operands.
    w_h_fused = jnp.concatenate(
        [params["query_wt"], params["w_hh_t"], params["w_pre_t"][E:E + H]],
        axis=1).astype(jnp.bfloat16)                                                    # (H, 5H)
    w_ctx_fused = jnp.concatenate(
        [params["w_ih_t"][E:], params["w_pre_t"][E + H:]],
        axis=1).astype(jnp.bfloat16)                                                    # (2H, 4H)
    energy_v = params["energy_v"].reshape(1, 1, H)

    inputs = (trg_fused, encoder_hidden, src_mask, proj_key, h0,
              w_h_fused, w_ctx_fused, energy_v, params["b_hh"])
    vmem = lambda: pl.BlockSpec(memory_space=pltpu.MemorySpace.VMEM)

    decoder_states, pre_output, hidden = pl.pallas_call(
        decoder_kernel,
        out_shape=(
            jax.ShapeDtypeStruct((B, T, H), jnp.float32),   # decoder_states
            jax.ShapeDtypeStruct((B, T, H), jnp.float32),   # pre_output
            jax.ShapeDtypeStruct((1, B, H), jnp.float32),   # hidden
        ),
        in_specs=[vmem() for _ in inputs],
        out_specs=(vmem(), vmem(), vmem()),
    )(*inputs)
    return decoder_states, hidden, pre_output


def decoder_reference(trg_embed, encoder_hidden, encoder_final, src_mask, params):
    """Pure-JAX reference mirroring the PyTorch forward (eval mode, fp32)."""
    B, T, E = trg_embed.shape
    H = params["query_wt"].shape[0]
    h = jnp.tanh(encoder_final @ params["bridge_wt"] + params["bridge_b"])
    proj_key = jnp.einsum("bsk,kh->bsh", encoder_hidden, params["key_wt"],
                          precision=HIGHEST)
    dec, pre = [], []
    for i in range(T):
        prev = trg_embed[:, i]                                        # (B, E)
        q = jnp.dot(h, params["query_wt"], precision=HIGHEST)         # (B, H)
        t = jnp.tanh(proj_key + q[:, None, :])
        scores = jnp.einsum("bsh,ho->bs", t, params["energy_v"], precision=HIGHEST)
        scores = jnp.where(src_mask > 0, scores, -1e30)
        alphas = jax.nn.softmax(scores, axis=-1)
        context = jnp.einsum("bs,bsv->bv", alphas, encoder_hidden, precision=HIGHEST)
        x = jnp.concatenate([prev, context], axis=-1)
        gx = jnp.dot(x, params["w_ih_t"], precision=HIGHEST) + params["b_ih"]
        gh = jnp.dot(h, params["w_hh_t"], precision=HIGHEST) + params["b_hh"]
        r = jax.nn.sigmoid(gx[:, :H] + gh[:, :H])
        z = jax.nn.sigmoid(gx[:, H:2 * H] + gh[:, H:2 * H])
        n = jnp.tanh(gx[:, 2 * H:] + r * gh[:, 2 * H:])
        h = (1.0 - z) * n + z * h
        po = jnp.dot(jnp.concatenate([prev, h, context], axis=-1),
                     params["w_pre_t"], precision=HIGHEST)
        dec.append(h)
        pre.append(po)
    return jnp.stack(dec, axis=1), h[None, :, :], jnp.stack(pre, axis=1)


def init_params(key, emb_size, hidden_size):
    E, H = emb_size, hidden_size
    ks = jax.random.split(key, 10)
    s = 0.1
    # Stored pre-transposed for "x @ W" use.
    return {
        "bridge_wt": s * jax.random.normal(ks[0], (2 * H, H), jnp.float32),
        "bridge_b":  s * jax.random.normal(ks[1], (1, H), jnp.float32),
        "key_wt":    s * jax.random.normal(ks[2], (2 * H, H), jnp.float32),
        "query_wt":  s * jax.random.normal(ks[3], (H, H), jnp.float32),
        "energy_v":  s * jax.random.normal(ks[4], (H, 1), jnp.float32),
        "w_ih_t":    s * jax.random.normal(ks[5], (E + 2 * H, 3 * H), jnp.float32),
        "b_ih":      s * jax.random.normal(ks[6], (1, 3 * H), jnp.float32),
        "w_hh_t":    s * jax.random.normal(ks[7], (H, 3 * H), jnp.float32),
        "b_hh":      s * jax.random.normal(ks[8], (1, 3 * H), jnp.float32),
        "w_pre_t":   s * jax.random.normal(ks[9], (E + 3 * H, H), jnp.float32),
    }


if __name__ == "__main__":
    B, S, T, E, H = 2, 8, 6, 16, 32

    key = jax.random.PRNGKey(0)
    k_trg, k_enc, k_fin, k_par = jax.random.split(key, 4)

    trg_embed = jax.random.normal(k_trg, (B, T, E), jnp.float32)
    encoder_hidden = jax.random.normal(k_enc, (B, S, 2 * H), jnp.float32)
    encoder_final = jax.random.normal(k_fin, (B, 2 * H), jnp.float32)
    # source lengths 8 and 5 -> mask out the tail of batch element 1
    lengths = jnp.array([8, 5], dtype=jnp.int32)
    src_mask = (jnp.arange(S)[None, :] < lengths[:, None]).astype(jnp.float32)

    params = init_params(k_par, E, H)

    dec, hid, pre = decoder_forward(trg_embed, encoder_hidden, encoder_final,
                                    src_mask, params)
    jax.block_until_ready((dec, hid, pre))

    dec_r, hid_r, pre_r = decoder_reference(trg_embed, encoder_hidden,
                                            encoder_final, src_mask, params)

    assert dec.shape == (B, T, H) and hid.shape == (1, B, H) and pre.shape == (B, T, H)
    # bf16 single-pass MXU (f32 accumulation) vs fp32 HIGHEST reference.
    assert jnp.allclose(dec, dec_r, atol=5e-2, rtol=5e-2)
    assert jnp.allclose(hid, hid_r, atol=5e-2, rtol=5e-2)
    assert jnp.allclose(pre, pre_r, atol=5e-2, rtol=5e-2)

    print("KERNEL_OK")
</pallas_src>

<mosaic_0001>
module attributes {stable_mosaic.version = 11 : i64} {
  func.func @decoder_kernel(%arg0: memref<6x2x128xf32, #tpu.memory_space<vmem>>, %arg1: memref<2x8x64xf32, #tpu.memory_space<vmem>>, %arg2: memref<2x8xf32, #tpu.memory_space<vmem>>, %arg3: memref<2x8x32xf32, #tpu.memory_space<vmem>>, %arg4: memref<2x32xf32, #tpu.memory_space<vmem>>, %arg5: memref<32x160xbf16, #tpu.memory_space<vmem>>, %arg6: memref<64x128xbf16, #tpu.memory_space<vmem>>, %arg7: memref<1x1x32xf32, #tpu.memory_space<vmem>>, %arg8: memref<1x96xf32, #tpu.memory_space<vmem>>, %arg9: memref<2x6x32xf32, #tpu.memory_space<vmem>>, %arg10: memref<2x6x32xf32, #tpu.memory_space<vmem>>, %arg11: memref<1x2x32xf32, #tpu.memory_space<vmem>>) attributes {dimension_semantics = [], scalar_prefetch = 0 : i64, scratch_operands = 0 : i64, tpu.core_type = #tpu.core_type<tc>} {
    %c0 = arith.constant 0 : index
    %c0_0 = arith.constant 0 : index
    %c0_1 = arith.constant 0 : index
    %0 = vector.load %arg1[%c0, %c0_0, %c0_1] : memref<2x8x64xf32, #tpu.memory_space<vmem>>, vector<2x8x64xf32>
    %c0_2 = arith.constant 0 : index
    %c0_3 = arith.constant 0 : index
    %c0_4 = arith.constant 0 : index
    %1 = vector.load %arg3[%c0_2, %c0_3, %c0_4] : memref<2x8x32xf32, #tpu.memory_space<vmem>>, vector<2x8x32xf32>
    %c0_5 = arith.constant 0 : index
    %c0_6 = arith.constant 0 : index
    %2 = vector.load %arg2[%c0_5, %c0_6] : memref<2x8xf32, #tpu.memory_space<vmem>>, vector<2x8xf32>
    %cst = arith.constant 0.000000e+00 : f32
    %3 = vector.broadcast %cst : f32 to vector<2x8xf32>
    %4 = arith.cmpf ogt, %2, %3 : vector<2x8xf32>
    %c0_7 = arith.constant 0 : index
    %c0_8 = arith.constant 0 : index
    %c0_9 = arith.constant 0 : index
    %5 = vector.load %arg7[%c0_7, %c0_8, %c0_9] : memref<1x1x32xf32, #tpu.memory_space<vmem>>, vector<1x1x32xf32>
    %c0_10 = arith.constant 0 : index
    %c0_11 = arith.constant 0 : index
    %6 = vector.load %arg5[%c0_10, %c0_11] : memref<32x160xbf16, #tpu.memory_space<vmem>>, vector<32x160xbf16>
    %c0_12 = arith.constant 0 : index
    %c0_13 = arith.constant 0 : index
    %7 = vector.load %arg6[%c0_12, %c0_13] : memref<64x128xbf16, #tpu.memory_space<vmem>>, vector<64x128xbf16>
    %c0_14 = arith.constant 0 : index
    %c0_15 = arith.constant 0 : index
    %8 = vector.load %arg8[%c0_14, %c0_15] : memref<1x96xf32, #tpu.memory_space<vmem>>, vector<1x96xf32>
    %c0_16 = arith.constant 0 : index
    %c0_17 = arith.constant 0 : index
    %9 = vector.load %arg4[%c0_16, %c0_17] : memref<2x32xf32, #tpu.memory_space<vmem>>, vector<2x32xf32>
    %c0_18 = arith.constant 0 : index
    %c0_19 = arith.constant 0 : index
    %c0_20 = arith.constant 0 : index
    %10 = vector.load %arg0[%c0_18, %c0_19, %c0_20] : memref<6x2x128xf32, #tpu.memory_space<vmem>>, vector<1x2x128xf32>
    %11 = vector.shape_cast %10 : vector<1x2x128xf32> to vector<2x128xf32>
    %12 = arith.truncf %9 : vector<2x32xf32> to vector<2x32xbf16>
    %cst_21 = arith.constant dense<0.000000e+00> : vector<2x160xf32>
    %13 = tpu.matmul %12, %6, %cst_21 {dimension_numbers = #tpu.dot_dimension_numbers<[1], [0], [0], [1], [0, 0, 1, 1], [], []>} : vector<2x32xbf16>, vector<32x160xbf16>, vector<2x160xf32> -> vector<2x160xf32>
    %14 = vector.extract_strided_slice %13 {offsets = [0, 0], sizes = [2, 32], strides = [1, 1]} : vector<2x160xf32> to vector<2x32xf32>
    %15 = vector.extract_strided_slice %13 {offsets = [0, 32], sizes = [2, 96], strides = [1, 1]} : vector<2x160xf32> to vector<2x96xf32>
    %16 = vector.broadcast %8 : vector<1x96xf32> to vector<2x96xf32>
    %17 = arith.addf %15, %16 : vector<2x96xf32>
    %18 = vector.shape_cast %14 : vector<2x32xf32> to vector<2x1x32xf32>
    %19 = vector.broadcast %18 : vector<2x1x32xf32> to vector<2x8x32xf32>
    %20 = arith.addf %1, %19 : vector<2x8x32xf32>
    %21 = math.tanh %20 : vector<2x8x32xf32>
    %22 = vector.broadcast %5 : vector<1x1x32xf32> to vector<2x8x32xf32>
    %23 = arith.mulf %21, %22 : vector<2x8x32xf32>
    %cst_22 = arith.constant dense<0.000000e+00> : vector<2x8xf32>
    %24 = vector.multi_reduction <add>, %23, %cst_22 [2] : vector<2x8x32xf32> to vector<2x8xf32>
    %25 = math.exp %24 : vector<2x8xf32>
    %cst_23 = arith.constant 0.000000e+00 : f32
    %26 = vector.broadcast %cst_23 : f32 to vector<2x8xf32>
    %27 = arith.select %4, %25, %26 : vector<2x8xi1>, vector<2x8xf32>
    %cst_24 = arith.constant dense<0.000000e+00> : vector<2xf32>
    %28 = vector.multi_reduction <add>, %27, %cst_24 [1] : vector<2x8xf32> to vector<2xf32>
    %29 = vector.shape_cast %28 : vector<2xf32> to vector<2x1xf32>
    %30 = tpu.reciprocal %29 {approx = true} : vector<2x1xf32> -> vector<2x1xf32>
    %31 = vector.broadcast %30 : vector<2x1xf32> to vector<2x8xf32>
    %32 = arith.mulf %27, %31 : vector<2x8xf32>
    %33 = vector.shape_cast %32 : vector<2x8xf32> to vector<2x8x1xf32>
    %34 = vector.broadcast %33 : vector<2x8x1xf32> to vector<2x8x64xf32>
    %35 = arith.mulf %34, %0 : vector<2x8x64xf32>
    %cst_25 = arith.constant dense<0.000000e+00> : vector<2x64xf32>
    %36 = vector.multi_reduction <add>, %35, %cst_25 [1] : vector<2x8x64xf32> to vector<2x64xf32>
    %37 = arith.truncf %36 : vector<2x64xf32> to vector<2x64xbf16>
    %cst_26 = arith.constant dense<0.000000e+00> : vector<2x128xf32>
    %38 = tpu.matmul %37, %7, %cst_26 {dimension_numbers = #tpu.dot_dimension_numbers<[1], [0], [0], [1], [0, 0, 1, 1], [], []>} : vector<2x64xbf16>, vector<64x128xbf16>, vector<2x128xf32> -> vector<2x128xf32>
    %39 = vector.extract_strided_slice %11 {offsets = [0, 0], sizes = [2, 96], strides = [1, 1]} : vector<2x128xf32> to vector<2x96xf32>
    %40 = vector.extract_strided_slice %38 {offsets = [0, 0], sizes = [2, 96], strides = [1, 1]} : vector<2x128xf32> to vector<2x96xf32>
    %41 = arith.addf %39, %40 : vector<2x96xf32>
    %42 = vector.extract_strided_slice %41 {offsets = [0, 0], sizes = [2, 32], strides = [1, 1]} : vector<2x96xf32> to vector<2x32xf32>
    %43 = vector.extract_strided_slice %17 {offsets = [0, 0], sizes = [2, 32], strides = [1, 1]} : vector<2x96xf32> to vector<2x32xf32>
    %44 = arith.addf %42, %43 : vector<2x32xf32>
    %45 = arith.negf %44 : vector<2x32xf32>
    %46 = math.exp %45 : vector<2x32xf32>
    %cst_27 = arith.constant 1.000000e+00 : f32
    %47 = vector.broadcast %cst_27 : f32 to vector<2x32xf32>
    %48 = arith.addf %47, %46 : vector<2x32xf32>
    %49 = arith.divf %47, %48 : vector<2x32xf32>
    %50 = vector.extract_strided_slice %41 {offsets = [0, 32], sizes = [2, 32], strides = [1, 1]} : vector<2x96xf32> to vector<2x32xf32>
    %51 = vector.extract_strided_slice %17 {offsets = [0, 32], sizes = [2, 32], strides = [1, 1]} : vector<2x96xf32> to vector<2x32xf32>
    %52 = arith.addf %50, %51 : vector<2x32xf32>
    %53 = arith.negf %52 : vector<2x32xf32>
    %54 = math.exp %53 : vector<2x32xf32>
    %cst_28 = arith.constant 1.000000e+00 : f32
    %55 = vector.broadcast %cst_28 : f32 to vector<2x32xf32>
    %56 = arith.addf %55, %54 : vector<2x32xf32>
    %57 = arith.divf %55, %56 : vector<2x32xf32>
    %58 = vector.extract_strided_slice %41 {offsets = [0, 64], sizes = [2, 32], strides = [1, 1]} : vector<2x96xf32> to vector<2x32xf32>
    %59 = vector.extract_strided_slice %17 {offsets = [0, 64], sizes = [2, 32], strides = [1, 1]} : vector<2x96xf32> to vector<2x32xf32>
    %60 = arith.mulf %49, %59 : vector<2x32xf32>
    %61 = arith.addf %58, %60 : vector<2x32xf32>
    %62 = math.tanh %61 : vector<2x32xf32>
    %cst_29 = arith.constant 1.000000e+00 : f32
    %63 = vector.broadcast %cst_29 : f32 to vector<2x32xf32>
    %64 = arith.subf %63, %57 : vector<2x32xf32>
    %65 = arith.mulf %64, %62 : vector<2x32xf32>
    %66 = arith.mulf %57, %9 : vector<2x32xf32>
    %67 = arith.addf %65, %66 : vector<2x32xf32>
    %68 = vector.shape_cast %67 : vector<2x32xf32> to vector<2x1x32xf32>
    %c0_30 = arith.constant 0 : index
    %c0_31 = arith.constant 0 : index
    %c0_32 = arith.constant 0 : index
    %69 = vector.load %arg9[%c0_30, %c0_31, %c0_32] : memref<2x6x32xf32, #tpu.memory_space<vmem>>, vector<2x1x32xf32>
    tpu.vector_store %arg9[%c0_30, %c0_31, %c0_32], %68 {strides = array<i32>} : memref<2x6x32xf32, #tpu.memory_space<vmem>>, vector<2x1x32xf32>,
    %70 = vector.extract_strided_slice %11 {offsets = [0, 96], sizes = [2, 32], strides = [1, 1]} : vector<2x128xf32> to vector<2x32xf32>
    %71 = vector.extract_strided_slice %38 {offsets = [0, 96], sizes = [2, 32], strides = [1, 1]} : vector<2x128xf32> to vector<2x32xf32>
    %72 = arith.addf %70, %71 : vector<2x32xf32>
    %c1 = arith.constant 1 : index
    %c0_33 = arith.constant 0 : index
    %c0_34 = arith.constant 0 : index
    %73 = vector.load %arg0[%c1, %c0_33, %c0_34] : memref<6x2x128xf32, #tpu.memory_space<vmem>>, vector<1x2x128xf32>
    %74 = vector.shape_cast %73 : vector<1x2x128xf32> to vector<2x128xf32>
    %75 = arith.truncf %67 : vector<2x32xf32> to vector<2x32xbf16>
    %cst_35 = arith.constant dense<0.000000e+00> : vector<2x160xf32>
    %76 = tpu.matmul %75, %6, %cst_35 {dimension_numbers = #tpu.dot_dimension_numbers<[1], [0], [0], [1], [0, 0, 1, 1], [], []>} : vector<2x32xbf16>, vector<32x160xbf16>, vector<2x160xf32> -> vector<2x160xf32>
    %77 = vector.extract_strided_slice %76 {offsets = [0, 0], sizes = [2, 32], strides = [1, 1]} : vector<2x160xf32> to vector<2x32xf32>
    %78 = vector.extract_strided_slice %76 {offsets = [0, 32], sizes = [2, 96], strides = [1, 1]} : vector<2x160xf32> to vector<2x96xf32>
    %79 = vector.broadcast %8 : vector<1x96xf32> to vector<2x96xf32>
    %80 = arith.addf %78, %79 : vector<2x96xf32>
    %81 = vector.extract_strided_slice %76 {offsets = [0, 128], sizes = [2, 32], strides = [1, 1]} : vector<2x160xf32> to vector<2x32xf32>
    %82 = arith.addf %72, %81 : vector<2x32xf32>
    %83 = vector.shape_cast %82 : vector<2x32xf32> to vector<2x1x32xf32>
    %c0_36 = arith.constant 0 : index
    %c0_37 = arith.constant 0 : index
    %c0_38 = arith.constant 0 : index
    %84 = vector.load %arg10[%c0_36, %c0_37, %c0_38] : memref<2x6x32xf32, #tpu.memory_space<vmem>>, vector<2x1x32xf32>
    tpu.vector_store %arg10[%c0_36, %c0_37, %c0_38], %83 {strides = array<i32>} : memref<2x6x32xf32, #tpu.memory_space<vmem>>, vector<2x1x32xf32>,
    %85 = vector.shape_cast %77 : vector<2x32xf32> to vector<2x1x32xf32>
    %86 = vector.broadcast %85 : vector<2x1x32xf32> to vector<2x8x32xf32>
    %87 = arith.addf %1, %86 : vector<2x8x32xf32>
    %88 = math.tanh %87 : vector<2x8x32xf32>
    %89 = vector.broadcast %5 : vector<1x1x32xf32> to vector<2x8x32xf32>
    %90 = arith.mulf %88, %89 : vector<2x8x32xf32>
    %cst_39 = arith.constant dense<0.000000e+00> : vector<2x8xf32>
    %91 = vector.multi_reduction <add>, %90, %cst_39 [2] : vector<2x8x32xf32> to vector<2x8xf32>
    %92 = math.exp %91 : vector<2x8xf32>
    %cst_40 = arith.constant 0.000000e+00 : f32
    %93 = vector.broadcast %cst_40 : f32 to vector<2x8xf32>
    %94 = arith.select %4, %92, %93 : vector<2x8xi1>, vector<2x8xf32>
    %cst_41 = arith.constant dense<0.000000e+00> : vector<2xf32>
    %95 = vector.multi_reduction <add>, %94, %cst_41 [1] : vector<2x8xf32> to vector<2xf32>
    %96 = vector.shape_cast %95 : vector<2xf32> to vector<2x1xf32>
    %97 = tpu.reciprocal %96 {approx = true} : vector<2x1xf32> -> vector<2x1xf32>
    %98 = vector.broadcast %97 : vector<2x1xf32> to vector<2x8xf32>
    %99 = arith.mulf %94, %98 : vector<2x8xf32>
    %100 = vector.shape_cast %99 : vector<2x8xf32> to vector<2x8x1xf32>
    %101 = vector.broadcast %100 : vector<2x8x1xf32> to vector<2x8x64xf32>
    %102 = arith.mulf %101, %0 : vector<2x8x64xf32>
    %cst_42 = arith.constant dense<0.000000e+00> : vector<2x64xf32>
    %103 = vector.multi_reduction <add>, %102, %cst_42 [1] : vector<2x8x64xf32> to vector<2x64xf32>
    %104 = arith.truncf %103 : vector<2x64xf32> to vector<2x64xbf16>
    %cst_43 = arith.constant dense<0.000000e+00> : vector<2x128xf32>
    %105 = tpu.matmul %104, %7, %cst_43 {dimension_numbers = #tpu.dot_dimension_numbers<[1], [0], [0], [1], [0, 0, 1, 1], [], []>} : vector<2x64xbf16>, vector<64x128xbf16>, vector<2x128xf32> -> vector<2x128xf32>
    %106 = vector.extract_strided_slice %74 {offsets = [0, 0], sizes = [2, 96], strides = [1, 1]} : vector<2x128xf32> to vector<2x96xf32>
    %107 = vector.extract_strided_slice %105 {offsets = [0, 0], sizes = [2, 96], strides = [1, 1]} : vector<2x128xf32> to vector<2x96xf32>
    %108 = arith.addf %106, %107 : vector<2x96xf32>
    %109 = vector.extract_strided_slice %108 {offsets = [0, 0], sizes = [2, 32], strides = [1, 1]} : vector<2x96xf32> to vector<2x32xf32>
    %110 = vector.extract_strided_slice %80 {offsets = [0, 0], sizes = [2, 32], strides = [1, 1]} : vector<2x96xf32> to vector<2x32xf32>
    %111 = arith.addf %109, %110 : vector<2x32xf32>
    %112 = arith.negf %111 : vector<2x32xf32>
    %113 = math.exp %112 : vector<2x32xf32>
    %cst_44 = arith.constant 1.000000e+00 : f32
    %114 = vector.broadcast %cst_44 : f32 to vector<2x32xf32>
    %115 = arith.addf %114, %113 : vector<2x32xf32>
    %116 = arith.divf %114, %115 : vector<2x32xf32>
    %117 = vector.extract_strided_slice %108 {offsets = [0, 32], sizes = [2, 32], strides = [1, 1]} : vector<2x96xf32> to vector<2x32xf32>
    %118 = vector.extract_strided_slice %80 {offsets = [0, 32], sizes = [2, 32], strides = [1, 1]} : vector<2x96xf32> to vector<2x32xf32>
    %119 = arith.addf %117, %118 : vector<2x32xf32>
    %120 = arith.negf %119 : vector<2x32xf32>
    %121 = math.exp %120 : vector<2x32xf32>
    %cst_45 = arith.constant 1.000000e+00 : f32
    %122 = vector.broadcast %cst_45 : f32 to vector<2x32xf32>
    %123 = arith.addf %122, %121 : vector<2x32xf32>
    %124 = arith.divf %122, %123 : vector<2x32xf32>
    %125 = vector.extract_strided_slice %108 {offsets = [0, 64], sizes = [2, 32], strides = [1, 1]} : vector<2x96xf32> to vector<2x32xf32>
    %126 = vector.extract_strided_slice %80 {offsets = [0, 64], sizes = [2, 32], strides = [1, 1]} : vector<2x96xf32> to vector<2x32xf32>
    %127 = arith.mulf %116, %126 : vector<2x32xf32>
    %128 = arith.addf %125, %127 : vector<2x32xf32>
    %129 = math.tanh %128 : vector<2x32xf32>
    %cst_46 = arith.constant 1.000000e+00 : f32
    %130 = vector.broadcast %cst_46 : f32 to vector<2x32xf32>
    %131 = arith.subf %130, %124 : vector<2x32xf32>
    %132 = arith.mulf %131, %129 : vector<2x32xf32>
    %133 = arith.mulf %124, %67 : vector<2x32xf32>
    %134 = arith.addf %132, %133 : vector<2x32xf32>
    %135 = vector.shape_cast %134 : vector<2x32xf32> to vector<2x1x32xf32>
    %c0_47 = arith.constant 0 : index
    %c1_48 = arith.constant 1 : index
    %c0_49 = arith.constant 0 : index
    %136 = vector.load %arg9[%c0_47, %c1_48, %c0_49] : memref<2x6x32xf32, #tpu.memory_space<vmem>>, vector<2x1x32xf32>
    tpu.vector_store %arg9[%c0_47, %c1_48, %c0_49], %135 {strides = array<i32>} : memref<2x6x32xf32, #tpu.memory_space<vmem>>, vector<2x1x32xf32>,
    %137 = vector.extract_strided_slice %74 {offsets = [0, 96], sizes = [2, 32], strides = [1, 1]} : vector<2x128xf32> to vector<2x32xf32>
    %138 = vector.extract_strided_slice %105 {offsets = [0, 96], sizes = [2, 32], strides = [1, 1]} : vector<2x128xf32> to vector<2x32xf32>
    %139 = arith.addf %137, %138 : vector<2x32xf32>
    %c2 = arith.constant 2 : index
    %c0_50 = arith.constant 0 : index
    %c0_51 = arith.constant 0 : index
    %140 = vector.load %arg0[%c2, %c0_50, %c0_51] : memref<6x2x128xf32, #tpu.memory_space<vmem>>, vector<1x2x128xf32>
    %141 = vector.shape_cast %140 : vector<1x2x128xf32> to vector<2x128xf32>
    %142 = arith.truncf %134 : vector<2x32xf32> to vector<2x32xbf16>
    %cst_52 = arith.constant dense<0.000000e+00> : vector<2x160xf32>
    %143 = tpu.matmul %142, %6, %cst_52 {dimension_numbers = #tpu.dot_dimension_numbers<[1], [0], [0], [1], [0, 0, 1, 1], [], []>} : vector<2x32xbf16>, vector<32x160xbf16>, vector<2x160xf32> -> vector<2x160xf32>
    %144 = vector.extract_strided_slice %143 {offsets = [0, 0], sizes = [2, 32], strides = [1, 1]} : vector<2x160xf32> to vector<2x32xf32>
    %145 = vector.extract_strided_slice %143 {offsets = [0, 32], sizes = [2, 96], strides = [1, 1]} : vector<2x160xf32> to vector<2x96xf32>
    %146 = vector.broadcast %8 : vector<1x96xf32> to vector<2x96xf32>
    %147 = arith.addf %145, %146 : vector<2x96xf32>
    %148 = vector.extract_strided_slice %143 {offsets = [0, 128], sizes = [2, 32], strides = [1, 1]} : vector<2x160xf32> to vector<2x32xf32>
    %149 = arith.addf %139, %148 : vector<2x32xf32>
    %150 = vector.shape_cast %149 : vector<2x32xf32> to vector<2x1x32xf32>
    %c0_53 = arith.constant 0 : index
    %c1_54 = arith.constant 1 : index
    %c0_55 = arith.constant 0 : index
    %151 = vector.load %arg10[%c0_53, %c1_54, %c0_55] : memref<2x6x32xf32, #tpu.memory_space<vmem>>, vector<2x1x32xf32>
    tpu.vector_store %arg10[%c0_53, %c1_54, %c0_55], %150 {strides = array<i32>} : memref<2x6x32xf32, #tpu.memory_space<vmem>>, vector<2x1x32xf32>,
    %152 = vector.shape_cast %144 : vector<2x32xf32> to vector<2x1x32xf32>
    %153 = vector.broadcast %152 : vector<2x1x32xf32> to vector<2x8x32xf32>
    %154 = arith.addf %1, %153 : vector<2x8x32xf32>
    %155 = math.tanh %154 : vector<2x8x32xf32>
    %156 = vector.broadcast %5 : vector<1x1x32xf32> to vector<2x8x32xf32>
    %157 = arith.mulf %155, %156 : vector<2x8x32xf32>
    %cst_56 = arith.constant dense<0.000000e+00> : vector<2x8xf32>
    %158 = vector.multi_reduction <add>, %157, %cst_56 [2] : vector<2x8x32xf32> to vector<2x8xf32>
    %159 = math.exp %158 : vector<2x8xf32>
    %cst_57 = arith.constant 0.000000e+00 : f32
    %160 = vector.broadcast %cst_57 : f32 to vector<2x8xf32>
    %161 = arith.select %4, %159, %160 : vector<2x8xi1>, vector<2x8xf32>
    %cst_58 = arith.constant dense<0.000000e+00> : vector<2xf32>
    %162 = vector.multi_reduction <add>, %161, %cst_58 [1] : vector<2x8xf32> to vector<2xf32>
    %163 = vector.shape_cast %162 : vector<2xf32> to vector<2x1xf32>
    %164 = tpu.reciprocal %163 {approx = true} : vector<2x1xf32> -> vector<2x1xf32>
    %165 = vector.broadcast %164 : vector<2x1xf32> to vector<2x8xf32>
    %166 = arith.mulf %161, %165 : vector<2x8xf32>
    %167 = vector.shape_cast %166 : vector<2x8xf32> to vector<2x8x1xf32>
    %168 = vector.broadcast %167 : vector<2x8x1xf32> to vector<2x8x64xf32>
    %169 = arith.mulf %168, %0 : vector<2x8x64xf32>
    %cst_59 = arith.constant dense<0.000000e+00> : vector<2x64xf32>
    %170 = vector.multi_reduction <add>, %169, %cst_59 [1] : vector<2x8x64xf32> to vector<2x64xf32>
    %171 = arith.truncf %170 : vector<2x64xf32> to vector<2x64xbf16>
    %cst_60 = arith.constant dense<0.000000e+00> : vector<2x128xf32>
    %172 = tpu.matmul %171, %7, %cst_60 {dimension_numbers = #tpu.dot_dimension_numbers<[1], [0], [0], [1], [0, 0, 1, 1], [], []>} : vector<2x64xbf16>, vector<64x128xbf16>, vector<2x128xf32> -> vector<2x128xf32>
    %173 = vector.extract_strided_slice %141 {offsets = [0, 0], sizes = [2, 96], strides = [1, 1]} : vector<2x128xf32> to vector<2x96xf32>
    %174 = vector.extract_strided_slice %172 {offsets = [0, 0], sizes = [2, 96], strides = [1, 1]} : vector<2x128xf32> to vector<2x96xf32>
    %175 = arith.addf %173, %174 : vector<2x96xf32>
    %176 = vector.extract_strided_slice %175 {offsets = [0, 0], sizes = [2, 32], strides = [1, 1]} : vector<2x96xf32> to vector<2x32xf32>
    %177 = vector.extract_strided_slice %147 {offsets = [0, 0], sizes = [2, 32], strides = [1, 1]} : vector<2x96xf32> to vector<2x32xf32>
    %178 = arith.addf %176, %177 : vector<2x32xf32>
    %179 = arith.negf %178 : vector<2x32xf32>
    %180 = math.exp %179 : vector<2x32xf32>
    %cst_61 = arith.constant 1.000000e+00 : f32
    %181 = vector.broadcast %cst_61 : f32 to vector<2x32xf32>
    %182 = arith.addf %181, %180 : vector<2x32xf32>
    %183 = arith.divf %181, %182 : vector<2x32xf32>
    %184 = vector.extract_strided_slice %175 {offsets = [0, 32], sizes = [2, 32], strides = [1, 1]} : vector<2x96xf32> to vector<2x32xf32>
    %185 = vector.extract_strided_slice %147 {offsets = [0, 32], sizes = [2, 32], strides = [1, 1]} : vector<2x96xf32> to vector<2x32xf32>
    %186 = arith.addf %184, %185 : vector<2x32xf32>
    %187 = arith.negf %186 : vector<2x32xf32>
    %188 = math.exp %187 : vector<2x32xf32>
    %cst_62 = arith.constant 1.000000e+00 : f32
    %189 = vector.broadcast %cst_62 : f32 to vector<2x32xf32>
    %190 = arith.addf %189, %188 : vector<2x32xf32>
    %191 = arith.divf %189, %190 : vector<2x32xf32>
    %192 = vector.extract_strided_slice %175 {offsets = [0, 64], sizes = [2, 32], strides = [1, 1]} : vector<2x96xf32> to vector<2x32xf32>
    %193 = vector.extract_strided_slice %147 {offsets = [0, 64], sizes = [2, 32], strides = [1, 1]} : vector<2x96xf32> to vector<2x32xf32>
    %194 = arith.mulf %183, %193 : vector<2x32xf32>
    %195 = arith.addf %192, %194 : vector<2x32xf32>
    %196 = math.tanh %195 : vector<2x32xf32>
    %cst_63 = arith.constant 1.000000e+00 : f32
    %197 = vector.broadcast %cst_63 : f32 to vector<2x32xf32>
    %198 = arith.subf %197, %191 : vector<2x32xf32>
    %199 = arith.mulf %198, %196 : vector<2x32xf32>
    %200 = arith.mulf %191, %134 : vector<2x32xf32>
    %201 = arith.addf %199, %200 : vector<2x32xf32>
    %202 = vector.shape_cast %201 : vector<2x32xf32> to vector<2x1x32xf32>
    %c0_64 = arith.constant 0 : index
    %c2_65 = arith.constant 2 : index
    %c0_66 = arith.constant 0 : index
    %203 = vector.load %arg9[%c0_64, %c2_65, %c0_66] : memref<2x6x32xf32, #tpu.memory_space<vmem>>, vector<2x1x32xf32>
    tpu.vector_store %arg9[%c0_64, %c2_65, %c0_66], %202 {strides = array<i32>} : memref<2x6x32xf32, #tpu.memory_space<vmem>>, vector<2x1x32xf32>,
    %204 = vector.extract_strided_slice %141 {offsets = [0, 96], sizes = [2, 32], strides = [1, 1]} : vector<2x128xf32> to vector<2x32xf32>
    %205 = vector.extract_strided_slice %172 {offsets = [0, 96], sizes = [2, 32], strides = [1, 1]} : vector<2x128xf32> to vector<2x32xf32>
    %206 = arith.addf %204, %205 : vector<2x32xf32>
    %c3 = arith.constant 3 : index
    %c0_67 = arith.constant 0 : index
    %c0_68 = arith.constant 0 : index
    %207 = vector.load %arg0[%c3, %c0_67, %c0_68] : memref<6x2x128xf32, #tpu.memory_space<vmem>>, vector<1x2x128xf32>
    %208 = vector.shape_cast %207 : vector<1x2x128xf32> to vector<2x128xf32>
    %209 = arith.truncf %201 : vector<2x32xf32> to vector<2x32xbf16>
    %cst_69 = arith.constant dense<0.000000e+00> : vector<2x160xf32>
    %210 = tpu.matmul %209, %6, %cst_69 {dimension_numbers = #tpu.dot_dimension_numbers<[1], [0], [0], [1], [0, 0, 1, 1], [], []>} : vector<2x32xbf16>, vector<32x160xbf16>, vector<2x160xf32> -> vector<2x160xf32>
    %211 = vector.extract_strided_slice %210 {offsets = [0, 0], sizes = [2, 32], strides = [1, 1]} : vector<2x160xf32> to vector<2x32xf32>
    %212 = vector.extract_strided_slice %210 {offsets = [0, 32], sizes = [2, 96], strides = [1, 1]} : vector<2x160xf32> to vector<2x96xf32>
    %213 = vector.broadcast %8 : vector<1x96xf32> to vector<2x96xf32>
    %214 = arith.addf %212, %213 : vector<2x96xf32>
    %215 = vector.extract_strided_slice %210 {offsets = [0, 128], sizes = [2, 32], strides = [1, 1]} : vector<2x160xf32> to vector<2x32xf32>
    %216 = arith.addf %206, %215 : vector<2x32xf32>
    %217 = vector.shape_cast %216 : vector<2x32xf32> to vector<2x1x32xf32>
    %c0_70 = arith.constant 0 : index
    %c2_71 = arith.constant 2 : index
    %c0_72 = arith.constant 0 : index
    %218 = vector.load %arg10[%c0_70, %c2_71, %c0_72] : memref<2x6x32xf32, #tpu.memory_space<vmem>>, vector<2x1x32xf32>
    tpu.vector_store %arg10[%c0_70, %c2_71, %c0_72], %217 {strides = array<i32>} : memref<2x6x32xf32, #tpu.memory_space<vmem>>, vector<2x1x32xf32>,
    %219 = vector.shape_cast %211 : vector<2x32xf32> to vector<2x1x32xf32>
    %220 = vector.broadcast %219 : vector<2x1x32xf32> to vector<2x8x32xf32>
    %221 = arith.addf %1, %220 : vector<2x8x32xf32>
    %222 = math.tanh %221 : vector<2x8x32xf32>
    %223 = vector.broadcast %5 : vector<1x1x32xf32> to vector<2x8x32xf32>
    %224 = arith.mulf %222, %223 : vector<2x8x32xf32>
    %cst_73 = arith.constant dense<0.000000e+00> : vector<2x8xf32>
    %225 = vector.multi_reduction <add>, %224, %cst_73 [2] : vector<2x8x32xf32> to vector<2x8xf32>
    %226 = math.exp %225 : vector<2x8xf32>
    %cst_74 = arith.constant 0.000000e+00 : f32
    %227 = vector.broadcast %cst_74 : f32 to vector<2x8xf32>
    %228 = arith.select %4, %226, %227 : vector<2x8xi1>, vector<2x8xf32>
    %cst_75 = arith.constant dense<0.000000e+00> : vector<2xf32>
    %229 = vector.multi_reduction <add>, %228, %cst_75 [1] : vector<2x8xf32> to vector<2xf32>
    %230 = vector.shape_cast %229 : vector<2xf32> to vector<2x1xf32>
    %231 = tpu.reciprocal %230 {approx = true} : vector<2x1xf32> -> vector<2x1xf32>
    %232 = vector.broadcast %231 : vector<2x1xf32> to vector<2x8xf32>
    %233 = arith.mulf %228, %232 : vector<2x8xf32>
    %234 = vector.shape_cast %233 : vector<2x8xf32> to vector<2x8x1xf32>
    %235 = vector.broadcast %234 : vector<2x8x1xf32> to vector<2x8x64xf32>
    %236 = arith.mulf %235, %0 : vector<2x8x64xf32>
    %cst_76 = arith.constant dense<0.000000e+00> : vector<2x64xf32>
    %237 = vector.multi_reduction <add>, %236, %cst_76 [1] : vector<2x8x64xf32> to vector<2x64xf32>
    %238 = arith.truncf %237 : vector<2x64xf32> to vector<2x64xbf16>
    %cst_77 = arith.constant dense<0.000000e+00> : vector<2x128xf32>
    %239 = tpu.matmul %238, %7, %cst_77 {dimension_numbers = #tpu.dot_dimension_numbers<[1], [0], [0], [1], [0, 0, 1, 1], [], []>} : vector<2x64xbf16>, vector<64x128xbf16>, vector<2x128xf32> -> vector<2x128xf32>
    %240 = vector.extract_strided_slice %208 {offsets = [0, 0], sizes = [2, 96], strides = [1, 1]} : vector<2x128xf32> to vector<2x96xf32>
    %241 = vector.extract_strided_slice %239 {offsets = [0, 0], sizes = [2, 96], strides = [1, 1]} : vector<2x128xf32> to vector<2x96xf32>
    %242 = arith.addf %240, %241 : vector<2x96xf32>
    %243 = vector.extract_strided_slice %242 {offsets = [0, 0], sizes = [2, 32], strides = [1, 1]} : vector<2x96xf32> to vector<2x32xf32>
    %244 = vector.extract_strided_slice %214 {offsets = [0, 0], sizes = [2, 32], strides = [1, 1]} : vector<2x96xf32> to vector<2x32xf32>
    %245 = arith.addf %243, %244 : vector<2x32xf32>
    %246 = arith.negf %245 : vector<2x32xf32>
    %247 = math.exp %246 : vector<2x32xf32>
    %cst_78 = arith.constant 1.000000e+00 : f32
    %248 = vector.broadcast %cst_78 : f32 to vector<2x32xf32>
    %249 = arith.addf %248, %247 : vector<2x32xf32>
    %250 = arith.divf %248, %249 : vector<2x32xf32>
    %251 = vector.extract_strided_slice %242 {offsets = [0, 32], sizes = [2, 32], strides = [1, 1]} : vector<2x96xf32> to vector<2x32xf32>
    %252 = vector.extract_strided_slice %214 {offsets = [0, 32], sizes = [2, 32], strides = [1, 1]} : vector<2x96xf32> to vector<2x32xf32>
    %253 = arith.addf %251, %252 : vector<2x32xf32>
    %254 = arith.negf %253 : vector<2x32xf32>
    %255 = math.exp %254 : vector<2x32xf32>
    %cst_79 = arith.constant 1.000000e+00 : f32
    %256 = vector.broadcast %cst_79 : f32 to vector<2x32xf32>
    %257 = arith.addf %256, %255 : vector<2x32xf32>
    %258 = arith.divf %256, %257 : vector<2x32xf32>
    %259 = vector.extract_strided_slice %242 {offsets = [0, 64], sizes = [2, 32], strides = [1, 1]} : vector<2x96xf32> to vector<2x32xf32>
    %260 = vector.extract_strided_slice %214 {offsets = [0, 64], sizes = [2, 32], strides = [1, 1]} : vector<2x96xf32> to vector<2x32xf32>
    %261 = arith.mulf %250, %260 : vector<2x32xf32>
    %262 = arith.addf %259, %261 : vector<2x32xf32>
    %263 = math.tanh %262 : vector<2x32xf32>
    %cst_80 = arith.constant 1.000000e+00 : f32
    %264 = vector.broadcast %cst_80 : f32 to vector<2x32xf32>
    %265 = arith.subf %264, %258 : vector<2x32xf32>
    %266 = arith.mulf %265, %263 : vector<2x32xf32>
    %267 = arith.mulf %258, %201 : vector<2x32xf32>
    %268 = arith.addf %266, %267 : vector<2x32xf32>
    %269 = vector.shape_cast %268 : vector<2x32xf32> to vector<2x1x32xf32>
    %c0_81 = arith.constant 0 : index
    %c3_82 = arith.constant 3 : index
    %c0_83 = arith.constant 0 : index
    %270 = vector.load %arg9[%c0_81, %c3_82, %c0_83] : memref<2x6x32xf32, #tpu.memory_space<vmem>>, vector<2x1x32xf32>
    tpu.vector_store %arg9[%c0_81, %c3_82, %c0_83], %269 {strides = array<i32>} : memref<2x6x32xf32, #tpu.memory_space<vmem>>, vector<2x1x32xf32>,
    %271 = vector.extract_strided_slice %208 {offsets = [0, 96], sizes = [2, 32], strides = [1, 1]} : vector<2x128xf32> to vector<2x32xf32>
    %272 = vector.extract_strided_slice %239 {offsets = [0, 96], sizes = [2, 32], strides = [1, 1]} : vector<2x128xf32> to vector<2x32xf32>
    %273 = arith.addf %271, %272 : vector<2x32xf32>
    %c4 = arith.constant 4 : index
    %c0_84 = arith.constant 0 : index
    %c0_85 = arith.constant 0 : index
    %274 = vector.load %arg0[%c4, %c0_84, %c0_85] : memref<6x2x128xf32, #tpu.memory_space<vmem>>, vector<1x2x128xf32>
    %275 = vector.shape_cast %274 : vector<1x2x128xf32> to vector<2x128xf32>
    %276 = arith.truncf %268 : vector<2x32xf32> to vector<2x32xbf16>
    %cst_86 = arith.constant dense<0.000000e+00> : vector<2x160xf32>
    %277 = tpu.matmul %276, %6, %cst_86 {dimension_numbers = #tpu.dot_dimension_numbers<[1], [0], [0], [1], [0, 0, 1, 1], [], []>} : vector<2x32xbf16>, vector<32x160xbf16>, vector<2x160xf32> -> vector<2x160xf32>
    %278 = vector.extract_strided_slice %277 {offsets = [0, 0], sizes = [2, 32], strides = [1, 1]} : vector<2x160xf32> to vector<2x32xf32>
    %279 = vector.extract_strided_slice %277 {offsets = [0, 32], sizes = [2, 96], strides = [1, 1]} : vector<2x160xf32> to vector<2x96xf32>
    %280 = vector.broadcast %8 : vector<1x96xf32> to vector<2x96xf32>
    %281 = arith.addf %279, %280 : vector<2x96xf32>
    %282 = vector.extract_strided_slice %277 {offsets = [0, 128], sizes = [2, 32], strides = [1, 1]} : vector<2x160xf32> to vector<2x32xf32>
    %283 = arith.addf %273, %282 : vector<2x32xf32>
    %284 = vector.shape_cast %283 : vector<2x32xf32> to vector<2x1x32xf32>
    %c0_87 = arith.constant 0 : index
    %c3_88 = arith.constant 3 : index
    %c0_89 = arith.constant 0 : index
    %285 = vector.load %arg10[%c0_87, %c3_88, %c0_89] : memref<2x6x32xf32, #tpu.memory_space<vmem>>, vector<2x1x32xf32>
    tpu.vector_store %arg10[%c0_87, %c3_88, %c0_89], %284 {strides = array<i32>} : memref<2x6x32xf32, #tpu.memory_space<vmem>>, vector<2x1x32xf32>,
    %286 = vector.shape_cast %278 : vector<2x32xf32> to vector<2x1x32xf32>
    %287 = vector.broadcast %286 : vector<2x1x32xf32> to vector<2x8x32xf32>
    %288 = arith.addf %1, %287 : vector<2x8x32xf32>
    %289 = math.tanh %288 : vector<2x8x32xf32>
    %290 = vector.broadcast %5 : vector<1x1x32xf32> to vector<2x8x32xf32>
    %291 = arith.mulf %289, %290 : vector<2x8x32xf32>
    %cst_90 = arith.constant dense<0.000000e+00> : vector<2x8xf32>
    %292 = vector.multi_reduction <add>, %291, %cst_90 [2] : vector<2x8x32xf32> to vector<2x8xf32>
    %293 = math.exp %292 : vector<2x8xf32>
    %cst_91 = arith.constant 0.000000e+00 : f32
    %294 = vector.broadcast %cst_91 : f32 to vector<2x8xf32>
    %295 = arith.select %4, %293, %294 : vector<2x8xi1>, vector<2x8xf32>
    %cst_92 = arith.constant dense<0.000000e+00> : vector<2xf32>
    %296 = vector.multi_reduction <add>, %295, %cst_92 [1] : vector<2x8xf32> to vector<2xf32>
    %297 = vector.shape_cast %296 : vector<2xf32> to vector<2x1xf32>
    %298 = tpu.reciprocal %297 {approx = true} : vector<2x1xf32> -> vector<2x1xf32>
    %299 = vector.broadcast %298 : vector<2x1xf32> to vector<2x8xf32>
    %300 = arith.mulf %295, %299 : vector<2x8xf32>
    %301 = vector.shape_cast %300 : vector<2x8xf32> to vector<2x8x1xf32>
    %302 = vector.broadcast %301 : vector<2x8x1xf32> to vector<2x8x64xf32>
    %303 = arith.mulf %302, %0 : vector<2x8x64xf32>
    %cst_93 = arith.constant dense<0.000000e+00> : vector<2x64xf32>
    %304 = vector.multi_reduction <add>, %303, %cst_93 [1] : vector<2x8x64xf32> to vector<2x64xf32>
    %305 = arith.truncf %304 : vector<2x64xf32> to vector<2x64xbf16>
    %cst_94 = arith.constant dense<0.000000e+00> : vector<2x128xf32>
    %306 = tpu.matmul %305, %7, %cst_94 {dimension_numbers = #tpu.dot_dimension_numbers<[1], [0], [0], [1], [0, 0, 1, 1], [], []>} : vector<2x64xbf16>, vector<64x128xbf16>, vector<2x128xf32> -> vector<2x128xf32>
    %307 = vector.extract_strided_slice %275 {offsets = [0, 0], sizes = [2, 96], strides = [1, 1]} : vector<2x128xf32> to vector<2x96xf32>
    %308 = vector.extract_strided_slice %306 {offsets = [0, 0], sizes = [2, 96], strides = [1, 1]} : vector<2x128xf32> to vector<2x96xf32>
    %309 = arith.addf %307, %308 : vector<2x96xf32>
    %310 = vector.extract_strided_slice %309 {offsets = [0, 0], sizes = [2, 32], strides = [1, 1]} : vector<2x96xf32> to vector<2x32xf32>
    %311 = vector.extract_strided_slice %281 {offsets = [0, 0], sizes = [2, 32], strides = [1, 1]} : vector<2x96xf32> to vector<2x32xf32>
    %312 = arith.addf %310, %311 : vector<2x32xf32>
    %313 = arith.negf %312 : vector<2x32xf32>
    %314 = math.exp %313 : vector<2x32xf32>
    %cst_95 = arith.constant 1.000000e+00 : f32
    %315 = vector.broadcast %cst_95 : f32 to vector<2x32xf32>
    %316 = arith.addf %315, %314 : vector<2x32xf32>
    %317 = arith.divf %315, %316 : vector<2x32xf32>
    %318 = vector.extract_strided_slice %309 {offsets = [0, 32], sizes = [2, 32], strides = [1, 1]} : vector<2x96xf32> to vector<2x32xf32>
    %319 = vector.extract_strided_slice %281 {offsets = [0, 32], sizes = [2, 32], strides = [1, 1]} : vector<2x96xf32> to vector<2x32xf32>
    %320 = arith.addf %318, %319 : vector<2x32xf32>
    %321 = arith.negf %320 : vector<2x32xf32>
    %322 = math.exp %321 : vector<2x32xf32>
    %cst_96 = arith.constant 1.000000e+00 : f32
    %323 = vector.broadcast %cst_96 : f32 to vector<2x32xf32>
    %324 = arith.addf %323, %322 : vector<2x32xf32>
    %325 = arith.divf %323, %324 : vector<2x32xf32>
    %326 = vector.extract_strided_slice %309 {offsets = [0, 64], sizes = [2, 32], strides = [1, 1]} : vector<2x96xf32> to vector<2x32xf32>
    %327 = vector.extract_strided_slice %281 {offsets = [0, 64], sizes = [2, 32], strides = [1, 1]} : vector<2x96xf32> to vector<2x32xf32>
    %328 = arith.mulf %317, %327 : vector<2x32xf32>
    %329 = arith.addf %326, %328 : vector<2x32xf32>
    %330 = math.tanh %329 : vector<2x32xf32>
    %cst_97 = arith.constant 1.000000e+00 : f32
    %331 = vector.broadcast %cst_97 : f32 to vector<2x32xf32>
    %332 = arith.subf %331, %325 : vector<2x32xf32>
    %333 = arith.mulf %332, %330 : vector<2x32xf32>
    %334 = arith.mulf %325, %268 : vector<2x32xf32>
    %335 = arith.addf %333, %334 : vector<2x32xf32>
    %336 = vector.shape_cast %335 : vector<2x32xf32> to vector<2x1x32xf32>
    %c0_98 = arith.constant 0 : index
    %c4_99 = arith.constant 4 : index
    %c0_100 = arith.constant 0 : index
    %337 = vector.load %arg9[%c0_98, %c4_99, %c0_100] : memref<2x6x32xf32, #tpu.memory_space<vmem>>, vector<2x1x32xf32>
    tpu.vector_store %arg9[%c0_98, %c4_99, %c0_100], %336 {strides = array<i32>} : memref<2x6x32xf32, #tpu.memory_space<vmem>>, vector<2x1x32xf32>,
    %338 = vector.extract_strided_slice %275 {offsets = [0, 96], sizes = [2, 32], strides = [1, 1]} : vector<2x128xf32> to vector<2x32xf32>
    %339 = vector.extract_strided_slice %306 {offsets = [0, 96], sizes = [2, 32], strides = [1, 1]} : vector<2x128xf32> to vector<2x32xf32>
    %340 = arith.addf %338, %339 : vector<2x32xf32>
    %c5 = arith.constant 5 : index
    %c0_101 = arith.constant 0 : index
    %c0_102 = arith.constant 0 : index
    %341 = vector.load %arg0[%c5, %c0_101, %c0_102] : memref<6x2x128xf32, #tpu.memory_space<vmem>>, vector<1x2x128xf32>
    %342 = vector.shape_cast %341 : vector<1x2x128xf32> to vector<2x128xf32>
    %343 = arith.truncf %335 : vector<2x32xf32> to vector<2x32xbf16>
    %cst_103 = arith.constant dense<0.000000e+00> : vector<2x160xf32>
    %344 = tpu.matmul %343, %6, %cst_103 {dimension_numbers = #tpu.dot_dimension_numbers<[1], [0], [0], [1], [0, 0, 1, 1], [], []>} : vector<2x32xbf16>, vector<32x160xbf16>, vector<2x160xf32> -> vector<2x160xf32>
    %345 = vector.extract_strided_slice %344 {offsets = [0, 0], sizes = [2, 32], strides = [1, 1]} : vector<2x160xf32> to vector<2x32xf32>
    %346 = vector.extract_strided_slice %344 {offsets = [0, 32], sizes = [2, 96], strides = [1, 1]} : vector<2x160xf32> to vector<2x96xf32>
    %347 = vector.broadcast %8 : vector<1x96xf32> to vector<2x96xf32>
    %348 = arith.addf %346, %347 : vector<2x96xf32>
    %349 = vector.extract_strided_slice %344 {offsets = [0, 128], sizes = [2, 32], strides = [1, 1]} : vector<2x160xf32> to vector<2x32xf32>
    %350 = arith.addf %340, %349 : vector<2x32xf32>
    %351 = vector.shape_cast %350 : vector<2x32xf32> to vector<2x1x32xf32>
    %c0_104 = arith.constant 0 : index
    %c4_105 = arith.constant 4 : index
    %c0_106 = arith.constant 0 : index
    %352 = vector.load %arg10[%c0_104, %c4_105, %c0_106] : memref<2x6x32xf32, #tpu.memory_space<vmem>>, vector<2x1x32xf32>
    tpu.vector_store %arg10[%c0_104, %c4_105, %c0_106], %351 {strides = array<i32>} : memref<2x6x32xf32, #tpu.memory_space<vmem>>, vector<2x1x32xf32>,
    %353 = vector.shape_cast %345 : vector<2x32xf32> to vector<2x1x32xf32>
    %354 = vector.broadcast %353 : vector<2x1x32xf32> to vector<2x8x32xf32>
    %355 = arith.addf %1, %354 : vector<2x8x32xf32>
    %356 = math.tanh %355 : vector<2x8x32xf32>
    %357 = vector.broadcast %5 : vector<1x1x32xf32> to vector<2x8x32xf32>
    %358 = arith.mulf %356, %357 : vector<2x8x32xf32>
    %cst_107 = arith.constant dense<0.000000e+00> : vector<2x8xf32>
    %359 = vector.multi_reduction <add>, %358, %cst_107 [2] : vector<2x8x32xf32> to vector<2x8xf32>
    %360 = math.exp %359 : vector<2x8xf32>
    %cst_108 = arith.constant 0.000000e+00 : f32
    %361 = vector.broadcast %cst_108 : f32 to vector<2x8xf32>
    %362 = arith.select %4, %360, %361 : vector<2x8xi1>, vector<2x8xf32>
    %cst_109 = arith.constant dense<0.000000e+00> : vector<2xf32>
    %363 = vector.multi_reduction <add>, %362, %cst_109 [1] : vector<2x8xf32> to vector<2xf32>
    %364 = vector.shape_cast %363 : vector<2xf32> to vector<2x1xf32>
    %365 = tpu.reciprocal %364 {approx = true} : vector<2x1xf32> -> vector<2x1xf32>
    %366 = vector.broadcast %365 : vector<2x1xf32> to vector<2x8xf32>
    %367 = arith.mulf %362, %366 : vector<2x8xf32>
    %368 = vector.shape_cast %367 : vector<2x8xf32> to vector<2x8x1xf32>
    %369 = vector.broadcast %368 : vector<2x8x1xf32> to vector<2x8x64xf32>
    %370 = arith.mulf %369, %0 : vector<2x8x64xf32>
    %cst_110 = arith.constant dense<0.000000e+00> : vector<2x64xf32>
    %371 = vector.multi_reduction <add>, %370, %cst_110 [1] : vector<2x8x64xf32> to vector<2x64xf32>
    %372 = arith.truncf %371 : vector<2x64xf32> to vector<2x64xbf16>
    %cst_111 = arith.constant dense<0.000000e+00> : vector<2x128xf32>
    %373 = tpu.matmul %372, %7, %cst_111 {dimension_numbers = #tpu.dot_dimension_numbers<[1], [0], [0], [1], [0, 0, 1, 1], [], []>} : vector<2x64xbf16>, vector<64x128xbf16>, vector<2x128xf32> -> vector<2x128xf32>
    %374 = vector.extract_strided_slice %342 {offsets = [0, 0], sizes = [2, 96], strides = [1, 1]} : vector<2x128xf32> to vector<2x96xf32>
    %375 = vector.extract_strided_slice %373 {offsets = [0, 0], sizes = [2, 96], strides = [1, 1]} : vector<2x128xf32> to vector<2x96xf32>
    %376 = arith.addf %374, %375 : vector<2x96xf32>
    %377 = vector.extract_strided_slice %376 {offsets = [0, 0], sizes = [2, 32], strides = [1, 1]} : vector<2x96xf32> to vector<2x32xf32>
    %378 = vector.extract_strided_slice %348 {offsets = [0, 0], sizes = [2, 32], strides = [1, 1]} : vector<2x96xf32> to vector<2x32xf32>
    %379 = arith.addf %377, %378 : vector<2x32xf32>
    %380 = arith.negf %379 : vector<2x32xf32>
    %381 = math.exp %380 : vector<2x32xf32>
    %cst_112 = arith.constant 1.000000e+00 : f32
    %382 = vector.broadcast %cst_112 : f32 to vector<2x32xf32>
    %383 = arith.addf %382, %381 : vector<2x32xf32>
    %384 = arith.divf %382, %383 : vector<2x32xf32>
    %385 = vector.extract_strided_slice %376 {offsets = [0, 32], sizes = [2, 32], strides = [1, 1]} : vector<2x96xf32> to vector<2x32xf32>
    %386 = vector.extract_strided_slice %348 {offsets = [0, 32], sizes = [2, 32], strides = [1, 1]} : vector<2x96xf32> to vector<2x32xf32>
    %387 = arith.addf %385, %386 : vector<2x32xf32>
    %388 = arith.negf %387 : vector<2x32xf32>
    %389 = math.exp %388 : vector<2x32xf32>
    %cst_113 = arith.constant 1.000000e+00 : f32
    %390 = vector.broadcast %cst_113 : f32 to vector<2x32xf32>
    %391 = arith.addf %390, %389 : vector<2x32xf32>
    %392 = arith.divf %390, %391 : vector<2x32xf32>
    %393 = vector.extract_strided_slice %376 {offsets = [0, 64], sizes = [2, 32], strides = [1, 1]} : vector<2x96xf32> to vector<2x32xf32>
    %394 = vector.extract_strided_slice %348 {offsets = [0, 64], sizes = [2, 32], strides = [1, 1]} : vector<2x96xf32> to vector<2x32xf32>
    %395 = arith.mulf %384, %394 : vector<2x32xf32>
    %396 = arith.addf %393, %395 : vector<2x32xf32>
    %397 = math.tanh %396 : vector<2x32xf32>
    %cst_114 = arith.constant 1.000000e+00 : f32
    %398 = vector.broadcast %cst_114 : f32 to vector<2x32xf32>
    %399 = arith.subf %398, %392 : vector<2x32xf32>
    %400 = arith.mulf %399, %397 : vector<2x32xf32>
    %401 = arith.mulf %392, %335 : vector<2x32xf32>
    %402 = arith.addf %400, %401 : vector<2x32xf32>
    %403 = vector.shape_cast %402 : vector<2x32xf32> to vector<2x1x32xf32>
    %c0_115 = arith.constant 0 : index
    %c5_116 = arith.constant 5 : index
    %c0_117 = arith.constant 0 : index
    %404 = vector.load %arg9[%c0_115, %c5_116, %c0_117] : memref<2x6x32xf32, #tpu.memory_space<vmem>>, vector<2x1x32xf32>
    tpu.vector_store %arg9[%c0_115, %c5_116, %c0_117], %403 {strides = array<i32>} : memref<2x6x32xf32, #tpu.memory_space<vmem>>, vector<2x1x32xf32>,
    %405 = vector.extract_strided_slice %342 {offsets = [0, 96], sizes = [2, 32], strides = [1, 1]} : vector<2x128xf32> to vector<2x32xf32>
    %406 = vector.extract_strided_slice %373 {offsets = [0, 96], sizes = [2, 32], strides = [1, 1]} : vector<2x128xf32> to vector<2x32xf32>
    %407 = arith.addf %405, %406 : vector<2x32xf32>
    %408 = vector.extract_strided_slice %6 {offsets = [0, 128], sizes = [32, 32], strides = [1, 1]} : vector<32x160xbf16> to vector<32x32xbf16>
    %409 = arith.truncf %402 : vector<2x32xf32> to vector<2x32xbf16>
    %cst_118 = arith.constant dense<0.000000e+00> : vector<2x32xf32>
    %410 = tpu.matmul %409, %408, %cst_118 {dimension_numbers = #tpu.dot_dimension_numbers<[1], [0], [0], [1], [0, 0, 1, 1], [], []>} : vector<2x32xbf16>, vector<32x32xbf16>, vector<2x32xf32> -> vector<2x32xf32>
    %411 = arith.addf %407, %410 : vector<2x32xf32>
    %412 = vector.shape_cast %411 : vector<2x32xf32> to vector<2x1x32xf32>
    %c0_119 = arith.constant 0 : index
    %c5_120 = arith.constant 5 : index
    %c0_121 = arith.constant 0 : index
    %413 = vector.load %arg10[%c0_119, %c5_120, %c0_121] : memref<2x6x32xf32, #tpu.memory_space<vmem>>, vector<2x1x32xf32>
    tpu.vector_store %arg10[%c0_119, %c5_120, %c0_121], %412 {strides = array<i32>} : memref<2x6x32xf32, #tpu.memory_space<vmem>>, vector<2x1x32xf32>,
    %414 = vector.shape_cast %402 : vector<2x32xf32> to vector<1x2x32xf32>
    %c0_122 = arith.constant 0 : index
    %c0_123 = arith.constant 0 : index
    %c0_124 = arith.constant 0 : index
    %415 = vector.load %arg11[%c0_122, %c0_123, %c0_124] : memref<1x2x32xf32, #tpu.memory_space<vmem>>, vector<1x2x32xf32>
    tpu.vector_store %arg11[%c0_122, %c0_123, %c0_124], %414 {strides = array<i32>} : memref<1x2x32xf32, #tpu.memory_space<vmem>>, vector<1x2x32xf32>,
    return
  }
}

</mosaic_0001>

<bundles_post_ra>
// kernel: decoder_forward.1
= control target key start
LH: loop header
LB: loop body
LE: loop exit
PB: predicated region body
PF: predicated region fallthrough
CT: control target
= control target key end

     0   :  { %v2364_v2 = vmov 0   ;;  %s3188_s0 = inlined_call_operand.vmem [shape: f32[6,2,128], index: 0, kind: input, shape index: {}]   ;;  %s3189_s1 = inlined_call_operand.vmem [shape: f32[2,8,64], index: 1, kind: input, shape index: {}]   ;;  %s3190_s2 = inlined_call_operand.vmem [shape: f32[2,8], index: 2, kind: input, shape index: {}]   ;;  %s3191_s3 = inlined_call_operand.vmem [shape: f32[2,8,32], index: 3, kind: input, shape index: {}]   ;;  %s3192_s4 = inlined_call_operand.vmem [shape: f32[2,32], index: 4, kind: input, shape index: {}]   ;;  %s3193_s5 = inlined_call_operand.vmem [shape: bf16[32,160], index: 5, kind: input, shape index: {}]   ;;  %s3194_s6 = inlined_call_operand.vmem [shape: bf16[64,128], index: 6, kind: input, shape index: {}]   ;;  %s3195_s7 = inlined_call_operand.vmem [shape: f32[1,1,32], index: 7, kind: input, shape index: {}]   ;;  %s3196_s8 = inlined_call_operand.vmem [shape: f32[1,96], index: 8, kind: input, shape index: {}]   ;;  %s3197_s9 = inlined_call_operand.vmem [shape: f32[2,6,32], index: 9, kind: output, shape index: {0}]   ;;  %s3198_s10 = inlined_call_operand.vmem [shape: f32[2,6,32], index: 10, kind: output, shape index: {1}]   ;;  %s3199_s11 = inlined_call_operand.hbm [shape: f32[1,2,32], index: 11, kind: output, shape index: {2}]  }
   0x1   :  { %v2435_v0 = vld [vmem:[%s3193_s5 + $0x4] ss:$8 sps:$4 sm:$0xff]   ;;  %v2440_v1 = vld [vmem:[%s3193_s5] ss:$8 sps:$4 sm:$0xff]   ;;  %116 = vmatprep.mubr.bf16.mxu0 %v2364_v2  ;;  %v2447_v3 = vld [vmem:[%s3193_s5 + $0x14] ss:$8 sps:$4 sm:$0xff]  }
   0x2   :  { %84 = vmatprep.subr.bf16.mxu0 %v2435_v0  ;;  %v2453_v4 = vld [vmem:[%s3193_s5 + $0x10] ss:$8 sps:$4 sm:$0xff]   ;;  %v2458_v5 = vld [vmem:[%s3192_s4] sm:$0x3] }
   0x3   :  { %85 = vmatpush1.bf16.msra.mxu0 %v2440_v1  ;;  %v59_v6 = vpack.c.bf16 %v2458_v5, %v2458_v5 }
   0x4   :  { %86 = vmatprep.subr.bf16.mxu0 %v2447_v3 }
   0x5   :  { %17 = vsyncpa [#allocation3], 0  ;;  %vm80_vm0 = vcmask 261120   ;;  %v2365_v7 = vmov 1966171168   ;;  %v137_v9 = vlaneseq  ;;  %v2482_v21 = vld [vmem:[%s3191_s3] sm:$0xff] }
   0x6   :  { %v135_v8 = vunpack.c.l.s4 %v2365_v7  ;;  %v2489_v24 = vld [vmem:[%s3191_s3 + $0x8] sm:$0xff]  ;;  %v2497_v28 = vld [vmem:[%s3195_s7] ss:$0 sm:$0xff]  ;;  %vm200_vm1 = vcmask 1041409   ;;  %vm204_vm3 = vcmask 58368   ;;  %v2366_v51 = vmov 0.0  }
   0x7   :  { %87 = vmatpush1.bf16.msra.mxu0 %v2453_v4  ;;  %v138_v11 = vshrl.u32 %v137_v9, 7  ;;  %v191_v39 = vand.u32 127, %v137_v9  ;;  %v2508_v42 = vld [vmem:[%s3190_s2] sm:$0x3]  ;;  %2135 = vmatprep.subr.bf16.mxu1 %v2366_v51  ;;  %v2531_v55 = vld [vmem:[%s3194_s6 + $0x8] sm:$0xff]   ;;  %v2540_v58 = vld [vmem:[%s3194_s6 + $0x10] sm:$0xff]  }
   0x8   :  { %399 = vmatprep.subr.bf16.mxu0 %v2435_v0  ;;  %v136_v10 = vunpack.c.0.s8 %v135_v8  ;;  %vm42_vm2 = vcmp.gt.f32.partialorder %v2508_v42, 0.0  ;;  %v2520_v50 = vld [vmem:[%s3194_s6] sm:$0xff]   ;;  %s2367_s22 = smov 32   ;;  %v2551_v60 = vld [vmem:[%s3194_s6 + $0x18] sm:$0xff]   ;;  %vm2368_vm4 = vmmov 0   ;;  %v2560_v61 = vld [vmem:[%s3189_s1 + $0x8] sm:$0xff] }
   0x9   :  { %v2476_v15 = vsub.s32 0, %v138_v11  ;;  %v2503_v40 = vsub.s32 %v191_v39, %v138_v11  ;;  %v2524_v52 = vsub.s32 1, %v138_v11  ;;  %2136 = vmatpush3.bf16.msra.mxu1 %v2520_v50  ;;  %v2073_v59 = vld [vmem:[%s3196_s8] ss:$0 sm:$0xff]  ;;  %2143 = vmatprep.mubr.msk.bf16.mxu1 %vm2368_vm4, %v2366_v51  ;;  %vm226_vm5 = vcmask 523264   ;;  %s2369_s27 = smov 96  }
   0xa   :  { %2072 = vmatmul.mubr.msk.bf16.vlgmr.msra.gmra.mrb[0].mxu0 %vm80_vm0, %v59_v6  ;;  %v2470_v12 = vsub.s32 %v136_v10, %v138_v11  ;;  %2137 = vmatprep.subr.bf16.mxu1 %v2366_v51  ;;  %v2565_v62 = vld [vmem:[%s3189_s1] sm:$0xff]  ;;  %s2370_s30 = smov 64   ;;  %vm387_vm6 = vcmask 253952   ;;  %vm2044_vm7 = vcmask 254976  }
   0xb   :  { %400 = vmatpush1.bf16.msra.mxu0 %v2440_v1  ;;  %431 = vmatprep.mubr.bf16.mxu0 %v2364_v2 }
   0xc   :  { %401 = vmatprep.subr.bf16.mxu0 %v2447_v3 }
   0xd   :  { %2138 = vmatpush3.bf16.msra.mxu1 %v2531_v55 }
   0xe   :  { %2139 = vmatprep.subr.bf16.mxu1 %v2366_v51 }
   0xf   :  { %402 = vmatpush1.bf16.msra.mxu0 %v2453_v4 }
  0x10   :  { %2147 = vmatprep.subr.bf16.mxu0 %v2366_v51 }
  0x11   :  { %2140 = vmatpush3.bf16.msra.mxu1 %v2540_v58 }
  0x12   :  { %2141 = vmatprep.subr.bf16.mxu1 %v2366_v51 }
  0x15   :  { %2142 = vmatpush3.bf16.msra.mxu1 %v2551_v60 }
  0x16   :  { %711 = vmatprep.subr.bf16.mxu1 %v2435_v0 }
  0xdd   :  { %v2472_v13 = vpop.f32.mrb[0].mxu0 }
  0xde   :  { %v140_v14 = vrot.slane %v2472_v13, %v2470_v12  ;;  %v120_v16 = vpop.f32.mrb[1].mxu0 }
  0xdf   :  { %v121_v17 = vpop.f32.mrb[2].mxu0 }
  0xe0   :  { %v141_v18 = vcombine.high %v140_v14, %v140_v14  ;;  %v148_v19 = vrot.slane %v140_v14, %v2470_v12  ;;  %v122_v20 = vpop.f32.mrb[3].mxu0 }
  0xe2   :  { %v155_v22 = vrot.slane %v141_v18, %v2470_v12  ;;  %v159_v23 = vrot.slane %v148_v19, %v2476_v15 }
  0xe4   :  { %v163_v25 = vrot.slane %v155_v22, %v2476_v15  ;;  %v166_v26 = vadd.f32 %v159_v23, %v2482_v21 }
  0xe6   :  { %v167_v27 = vadd.f32 %v163_v25, %v2489_v24  ;;  %2233 = vtanh.f32 %v166_v26 }
  0xe8   :  { %2235 = vtanh.f32 %v167_v27 }
  0xf0   :  { %v2234_v29 = vpop.eup %2233 }
  0xf1   :  { %v176_v30 = vmul.f32 %v2234_v29, %v2497_v28 }
  0xf2   :  { %v2236_v31 = vpop.eup %2235 }
  0xf3   :  { %v178_v32 = vsel %vm80_vm0, %v176_v30, 0.0  ;;  %v177_v33 = vmul.f32 %v2236_v31, %v2497_v28 }
  0xf4   :  { %179 = vadd.xlane.f32.xlu0 %v178_v32 }
  0xf5   :  { %v181_v34 = vsel %vm80_vm0, %v177_v33, 0.0 }
  0xf8   :  { %182 = vadd.xlane.f32.xlu0 %v181_v34 }
 0x181   :  { %v180_v35 = vpop.xlane.xlu0 %179 }
 0x182   :  { %v184_v36 = vmul.f32 1.442695, %v180_v35 }
 0x184   :  { %2237 = vpow2.f32 %v184_v36  ;;  %v58_v36 = vld [vmem:[%s3188_s0] sm:$0x3] }
 0x185   :  { %v183_v37 = vpop.xlane.xlu0 %182 }
 0x186   :  { %v186_v38 = vmul.f32 1.442695, %v183_v37 }
 0x188   :  { %2239 = vpow2.f32 %v186_v38 }
 0x18e   :  { %v2238_v41 = vpop.eup %2237 }
 0x18f   :  { %v195_v44 = vrot.slane %v2238_v41, %v2503_v40 }
 0x192   :  { %v2240_v43 = vpop.eup %2239 }
 0x193   :  { %v199_v45 = vrot.slane %v2240_v43, %v2503_v40 }
 0x195   :  { %v201_v46 = vsel %vm200_vm1, %v199_v45, %v195_v44 }
 0x196   :  { %v203_v47 = vsel %vm42_vm2, %v201_v46, 0.0 }
 0x197   :  { %v205_v48 = vsel %vm204_vm3, %v203_v47, 0.0 }
 0x198   :  { %206 = vadd.xlane.f32.xlu1 %v205_v48 }
 0x225   :  { %v207_v49 = vpop.xlane.xlu1 %206 }
 0x226   :  { %2241 = vrcp.f32 %v207_v49 }
 0x230   :  { %v2242_v53 = vpop.eup %2241 }
 0x231   :  { %v209_v54 = vmul.f32 %v2242_v53, %v203_v47 }
 0x233   :  { %v220_v56 = vrot.slane %v209_v54, %v2524_v52  ;;  %v213_v57 = vrot.slane %v209_v54, %v2476_v15 }
 0x235   :  { %222 = vbcast.lane.b32.xlu0 %v220_v56, 256  ;;  %215 = vbcast.lane.b32.xlu1 %v213_v57, 256 }
 0x239   :  { %129 = vrot.lane.b32.xlu1 %v2073_v59, %s2367_s22 }
 0x2a7   :  { %v223_v63 = vpop.permute.xlu0 %222  ;;  %v216_v6 = vpop.permute.xlu1 %215 }
 0x2a8   :  { %v225_v7 = vmul.f32 %v223_v63, %v2560_v61  ;;  %v224_v8 = vmul.f32 %v216_v6, %v2565_v62 }
 0x2aa   :  { %v234_v9 = vsel %vm226_vm5, %v225_v7, 0.0  ;;  %v227_v10 = vsel %vm226_vm5, %v224_v8, 0.0 }
 0x2ab   :  { %v235_v11 = vrot.slane %v234_v9, 4  ;;  %v228_v14 = vrot.slane %v227_v10, 4  ;;  %v2571_v16 = vpop.permute.xlu1 %129 }
 0x2ac   :  { %v132_v17 = vadd.f32 %v2571_v16, %v2472_v13 }
 0x2ad   :  { %v236_v18 = vadd.f32 %v235_v11, %v234_v9  ;;  %v229_v19 = vadd.f32 %v228_v14, %v227_v10 }
 0x2ae   :  { %318 = vrot.lane.b32.xlu1 %v132_v17, %s2369_s27 }
 0x2af   :  { %v237_v20 = vrot.slane %v236_v18, 2  ;;  %v230_v22 = vrot.slane %v229_v19, 2 }
 0x2b1   :  { %v238_v23 = vadd.f32 %v237_v20, %v236_v18  ;;  %v231_v25 = vadd.f32 %v230_v22, %v229_v19 }
 0x2b2   :  { %328 = vrot.lane.b32.xlu1 %v132_v17, %s2367_s22 }
 0x2b3   :  { %v239_v26 = vrot.slane %v238_v23, 1  ;;  %v232_v27 = vrot.slane %v231_v25, 1 }
 0x2b5   :  { %v240_v29 = vadd.f32 %v239_v26, %v238_v23  ;;  %v233_v30 = vadd.f32 %v232_v27, %v231_v25 }
 0x2b7   :  { %v242_v31 = vpack.c.bf16 %v240_v29, %v240_v29  ;;  %v241_v32 = vpack.c.bf16 %v233_v30, %v233_v30 }
 0x2b9   :  { %v246_v33 = vunpack.c.l.b16 %v242_v31  ;;  %v245_v34 = vunpack.c.l.b16 %v241_v32 }
 0x2bb   :  { %v247_v13 = vsel %vm200_vm1, %v246_v33, %v245_v34 }
 0x2bc   :  { %v248_v35 = vpack.c.b16 %v247_v13, %v247_v13 }
 0x2be   :  { %2144 = vmatmul.mubr.msk.bf16.vlgmr.msra.gmra.mrb[0].mxu1 %vm226_vm5, %v248_v35 }
 0x2bf   :  { %712 = vmatpush1.bf16.msra.mxu1 %v2440_v1  ;;  %743 = vmatprep.mubr.bf16.mxu1 %v2364_v2 }
 0x2c0   :  { %713 = vmatprep.subr.bf16.mxu1 %v2447_v3 }
 0x2c3   :  { %714 = vmatpush1.bf16.msra.mxu1 %v2453_v4 }
 0x2c4   :  { %2159 = vmatprep.subr.bf16.mxu1 %v2366_v51 }
 0x320   :  { %v319_v41 = vpop.permute.xlu1 %318 }
 0x324   :  { %v329_v53 = vpop.permute.xlu1 %328 }
 0x391   :  { %v310_v37 = vpop.f32.mrb[0].mxu1 }
 0x392   :  { %v2587_v38 = vadd.f32 %v310_v37, %v58_v36  ;;  %v2145_v39 = vpop.f32.mrb[1].mxu1 }
 0x393   :  { %v313_v43 = vpop.f32.mrb[2].mxu1 }
 0x394   :  { %v321_v44 = vadd.f32 %v319_v41, %v2587_v38  ;;  %v2146_v45 = vpop.f32.mrb[3].mxu1 }
 0x396   :  { %v2080_v46 = vmul.f32 -1.442695, %v321_v44 }
 0x398   :  { %2243 = vpow2.f32 %v2080_v46 }
 0x3a2   :  { %v2244_v47 = vpop.eup %2243 }
 0x3a3   :  { %v325_v48 = vadd.f32 1.0, %v2244_v47 }
 0x3a5   :  { %2245 = vrcp.f32 %v325_v48 }
 0x3af   :  { %v2246_v49 = vpop.eup %2245 }
 0x3b0   :  { %v331_v54 = vmul.f32 %v2246_v49, %v329_v53  ;;  %v338_v6 = vsub.f32 1.0, %v2246_v49 }
 0x3b2   :  { %333 = vrot.lane.b32.xlu0 %v331_v54, %s2370_s30 }
 0x3b6   :  { %345 = vrot.lane.b32.xlu0 %v2458_v5, %s2367_s22 }
 0x424   :  { %v334_v56 = vpop.permute.xlu0 %333 }
 0x425   :  { %v336_v57 = vadd.f32 %v334_v56, %v2587_v38 }
 0x427   :  { %2247 = vtanh.f32 %v336_v57 }
 0x428   :  { %v346_v63 = vpop.permute.xlu0 %345 }
 0x429   :  { %v348_v8 = vmul.f32 %v2246_v49, %v346_v63 }
 0x431   :  { %v2248_v59 = vpop.eup %2247 }
 0x432   :  { %340 = vrot.lane.b32.xlu1 %v2248_v59, %s2369_s27 }
 0x4a4   :  { %v341_v7 = vpop.permute.xlu1 %340 }
 0x4a5   :  { %v343_v9 = vmul.f32 %v341_v7, %v338_v6 }
 0x4a7   :  { %v2595_v10 = vadd.f32 %v348_v8, %v343_v9 }
 0x4a9   :  { %v392_v11 = vpack.c.bf16 %v2595_v10, %v2595_v10 }
 0x4ab   :  { %394 = vrot.lane.b32.xlu1 %v392_v11, %s2369_s27 }
 0x51d   :  { %v395_v5 = vpop.permute.xlu1 %394 }
 0x51e   :  { %2082 = vmatmul.mubr.msk.bf16.vlgmr.msra.gmra.mrb[4].mxu0 %vm80_vm0, %v395_v5 }
 0x51f   :  { %2148 = vmatpush3.bf16.msra.mxu0 %v2520_v50  ;;  %2155 = vmatprep.mubr.msk.bf16.mxu0 %vm2368_vm4, %v2366_v51 }
 0x520   :  { %2149 = vmatprep.subr.bf16.mxu0 %v2366_v51 }
 0x523   :  { %2150 = vmatpush3.bf16.msra.mxu0 %v2531_v55 }
 0x524   :  { %2151 = vmatprep.subr.bf16.mxu0 %v2366_v51 }
 0x527   :  { %2152 = vmatpush3.bf16.msra.mxu0 %v2540_v58 }
 0x528   :  { %2153 = vmatprep.subr.bf16.mxu0 %v2366_v51 }
 0x52b   :  { %2154 = vmatpush3.bf16.msra.mxu0 %v2551_v60 }
 0x52c   :  { %1023 = vmatprep.subr.bf16.mxu0 %v2435_v0 }
 0x5f1   :  { %v433_v14 = vpop.f32.mrb[4].mxu0 }
 0x5f2   :  { %v492_v17 = vrot.slane %v433_v14, %v2470_v12  ;;  %v2612_v18 = vpop.f32.mrb[5].mxu0  ;;  %v440_v63 = vadd.f32 %v433_v14, %v2571_v16 }
 0x5f3   :  { %v437_v19 = vpop.f32.mrb[6].mxu0 }
 0x5f4   :  { %v493_v20 = vcombine.high %v492_v17, %v492_v17  ;;  %v500_v22 = vrot.slane %v492_v17, %v2470_v12  ;;  %v438_v23 = vpop.f32.mrb[7].mxu0 }
 0x5f6   :  { %v507_v25 = vrot.slane %v493_v20, %v2470_v12  ;;  %v511_v26 = vrot.slane %v500_v22, %v2476_v15 }
 0x5f8   :  { %v515_v27 = vrot.slane %v507_v25, %v2476_v15  ;;  %v518_v29 = vadd.f32 %v511_v26, %v2482_v21 }
 0x5fa   :  { %v519_v30 = vadd.f32 %v515_v27, %v2489_v24  ;;  %2249 = vtanh.f32 %v518_v29 }
 0x5fc   :  { %2251 = vtanh.f32 %v519_v30 }
 0x604   :  { %v2250_v31 = vpop.eup %2249 }
 0x605   :  { %v522_v32 = vmul.f32 %v2250_v31, %v2497_v28 }
 0x606   :  { %v2252_v33 = vpop.eup %2251 }
 0x607   :  { %v524_v34 = vsel %vm80_vm0, %v522_v32, 0.0  ;;  %v523_v13 = vmul.f32 %v2252_v33, %v2497_v28 }
 0x608   :  { %525 = vadd.xlane.f32.xlu0 %v524_v34 }
 0x609   :  { %v527_v35 = vsel %vm80_vm0, %v523_v13, 0.0 }
 0x60a   :  { %528 = vadd.xlane.f32.xlu1 %v527_v35 }
 0x695   :  { %v526_v36 = vpop.xlane.xlu0 %525 }
 0x696   :  { %v530_v37 = vmul.f32 1.442695, %v526_v36 }
 0x697   :  { %v529_v39 = vpop.xlane.xlu1 %528 }
 0x698   :  { %2253 = vpow2.f32 %v530_v37  ;;  %v532_v41 = vmul.f32 1.442695, %v529_v39  ;;  %v2081_v37 = vld [vmem:[%s3188_s0 + $0x2] sm:$0x3] }
 0x69a   :  { %2255 = vpow2.f32 %v532_v41 }
 0x6a2   :  { %v2254_v43 = vpop.eup %2253 }
 0x6a3   :  { %v539_v45 = vrot.slane %v2254_v43, %v2503_v40 }
 0x6a4   :  { %v2256_v44 = vpop.eup %2255 }
 0x6a5   :  { %v543_v46 = vrot.slane %v2256_v44, %v2503_v40 }
 0x6a7   :  { %v544_v47 = vsel %vm200_vm1, %v543_v46, %v539_v45 }
 0x6a8   :  { %v546_v48 = vsel %vm42_vm2, %v544_v47, 0.0 }
 0x6a9   :  { %v547_v49 = vsel %vm204_vm3, %v546_v48, 0.0 }
 0x6aa   :  { %548 = vadd.xlane.f32.xlu0 %v547_v49 }
 0x737   :  { %v549_v53 = vpop.xlane.xlu0 %548 }
 0x738   :  { %2257 = vrcp.f32 %v549_v53 }
 0x742   :  { %v2258_v54 = vpop.eup %2257 }
 0x743   :  { %v551_v56 = vmul.f32 %v2258_v54, %v546_v48 }
 0x745   :  { %v562_v57 = vrot.slane %v551_v56, %v2524_v52  ;;  %v555_v59 = vrot.slane %v551_v56, %v2476_v15 }
 0x747   :  { %564 = vbcast.lane.b32.xlu1 %v562_v57, 256  ;;  %557 = vbcast.lane.b32.xlu0 %v555_v59, 256 }
 0x74b   :  { %645 = vrot.lane.b32.xlu0 %v440_v63, %s2367_s22  ;;  %635 = vrot.lane.b32.xlu1 %v440_v63, %s2369_s27 }
 0x7b9   :  { %v565_v6 = vpop.permute.xlu1 %564  ;;  %v558_v7 = vpop.permute.xlu0 %557 }
 0x7ba   :  { %v567_v8 = vmul.f32 %v565_v6, %v2560_v61  ;;  %v566_v9 = vmul.f32 %v558_v7, %v2565_v62 }
 0x7bc   :  { %v575_v11 = vsel %vm226_vm5, %v567_v8, 0.0  ;;  %v568_v5 = vsel %vm226_vm5, %v566_v9, 0.0 }
 0x7bd   :  { %v576_v17 = vrot.slane %v575_v11, 4  ;;  %v569_v19 = vrot.slane %v568_v5, 4  ;;  %v636_v44 = vpop.permute.xlu1 %635  ;;  %v646_v56 = vpop.permute.xlu0 %645 }
 0x7bf   :  { %v577_v20 = vadd.f32 %v576_v17, %v575_v11  ;;  %v570_v22 = vadd.f32 %v569_v19, %v568_v5 }
 0x7c1   :  { %v578_v23 = vrot.slane %v577_v20, 2  ;;  %v571_v14 = vrot.slane %v570_v22, 2 }
 0x7c3   :  { %v579_v25 = vadd.f32 %v578_v23, %v577_v20  ;;  %v572_v26 = vadd.f32 %v571_v14, %v570_v22 }
 0x7c5   :  { %v580_v27 = vrot.slane %v579_v25, 1  ;;  %v573_v29 = vrot.slane %v572_v26, 1 }
 0x7c7   :  { %v581_v30 = vadd.f32 %v580_v27, %v579_v25  ;;  %v574_v31 = vadd.f32 %v573_v29, %v572_v26 }
 0x7c9   :  { %v583_v32 = vpack.c.bf16 %v581_v30, %v581_v30  ;;  %v582_v33 = vpack.c.bf16 %v574_v31, %v574_v31 }
 0x7cb   :  { %v587_v34 = vunpack.c.l.b16 %v583_v32  ;;  %v586_v13 = vunpack.c.l.b16 %v582_v33 }
 0x7cd   :  { %v588_v35 = vsel %vm200_vm1, %v587_v34, %v586_v13 }
 0x7ce   :  { %v589_v36 = vpack.c.b16 %v588_v35, %v588_v35 }
 0x7d0   :  { %2156 = vmatmul.mubr.msk.bf16.vlgmr.msra.gmra.mrb[8].mxu0 %vm226_vm5, %v589_v36 }
 0x7d1   :  { %1024 = vmatpush1.bf16.msra.mxu0 %v2440_v1  ;;  %1055 = vmatprep.mubr.bf16.mxu0 %v2364_v2 }
 0x7d2   :  { %1025 = vmatprep.subr.bf16.mxu0 %v2447_v3 }
 0x7d5   :  { %1026 = vmatpush1.bf16.msra.mxu0 %v2453_v4 }
 0x7d6   :  { %2171 = vmatprep.subr.bf16.mxu0 %v2366_v51 }
 0x8a3   :  { %v627_v39 = vpop.f32.mrb[8].mxu0 }
 0x8a4   :  { %v2649_v41 = vadd.f32 %v2081_v37, %v627_v39  ;;  %v2157_v43 = vpop.f32.mrb[9].mxu0 }
 0x8a5   :  { %v630_v45 = vpop.f32.mrb[10].mxu0 }
 0x8a6   :  { %v638_v46 = vadd.f32 %v636_v44, %v2649_v41  ;;  %v2158_v47 = vpop.f32.mrb[11].mxu0 }
 0x8a8   :  { %v2084_v48 = vmul.f32 -1.442695, %v638_v46 }
 0x8aa   :  { %2259 = vpow2.f32 %v2084_v48 }
 0x8b4   :  { %v2260_v49 = vpop.eup %2259 }
 0x8b5   :  { %v642_v53 = vadd.f32 1.0, %v2260_v49 }
 0x8b7   :  { %2261 = vrcp.f32 %v642_v53 }
 0x8c1   :  { %v2262_v54 = vpop.eup %2261 }
 0x8c2   :  { %v648_v57 = vmul.f32 %v2262_v54, %v646_v56  ;;  %v655_v7 = vsub.f32 1.0, %v2262_v54  ;;  %v661_v9 = vmul.f32 %v2262_v54, %v2595_v10 }
 0x8c4   :  { %650 = vrot.lane.b32.xlu1 %v648_v57, %s2370_s30 }
 0x936   :  { %v651_v59 = vpop.permute.xlu1 %650 }
 0x937   :  { %v653_v63 = vadd.f32 %v651_v59, %v2649_v41 }
 0x939   :  { %2263 = vtanh.f32 %v653_v63 }
 0x943   :  { %v2264_v6 = vpop.eup %2263 }
 0x944   :  { %657 = vrot.lane.b32.xlu0 %v2264_v6, %s2369_s27 }
 0x9b6   :  { %v658_v8 = vpop.permute.xlu0 %657 }
 0x9b7   :  { %v660_v11 = vmul.f32 %v658_v8, %v655_v7 }
 0x9b9   :  { %v2656_v5 = vadd.f32 %v661_v9, %v660_v11 }
 0x9bb   :  { %v704_v17 = vpack.c.bf16 %v2656_v5, %v2656_v5 }
 0x9bd   :  { %706 = vrot.lane.b32.xlu1 %v704_v17, %s2369_s27 }
 0xa2f   :  { %v707_v19 = vpop.permute.xlu1 %706 }
 0xa30   :  { %2086 = vmatmul.mubr.msk.bf16.vlgmr.msra.gmra.mrb[4].mxu1 %vm80_vm0, %v707_v19 }
 0xa31   :  { %2160 = vmatpush3.bf16.msra.mxu1 %v2520_v50  ;;  %2167 = vmatprep.mubr.msk.bf16.mxu1 %vm2368_vm4, %v2366_v51 }
 0xa32   :  { %2161 = vmatprep.subr.bf16.mxu1 %v2366_v51 }
 0xa35   :  { %2162 = vmatpush3.bf16.msra.mxu1 %v2531_v55 }
 0xa36   :  { %2163 = vmatprep.subr.bf16.mxu1 %v2366_v51 }
 0xa39   :  { %2164 = vmatpush3.bf16.msra.mxu1 %v2540_v58 }
 0xa3a   :  { %2165 = vmatprep.subr.bf16.mxu1 %v2366_v51 }
 0xa3d   :  { %2166 = vmatpush3.bf16.msra.mxu1 %v2551_v60 }
 0xa3e   :  { %1335 = vmatprep.subr.bf16.mxu1 %v2435_v0 }
 0xb03   :  { %v745_v20 = vpop.f32.mrb[4].mxu1 }
 0xb04   :  { %v804_v22 = vrot.slane %v745_v20, %v2470_v12  ;;  %v2673_v23 = vpop.f32.mrb[5].mxu1  ;;  %v752_v9 = vadd.f32 %v745_v20, %v2571_v16 }
 0xb05   :  { %v749_v14 = vpop.f32.mrb[6].mxu1 }
 0xb06   :  { %v805_v25 = vcombine.high %v804_v22, %v804_v22  ;;  %v812_v26 = vrot.slane %v804_v22, %v2470_v12  ;;  %v750_v27 = vpop.f32.mrb[7].mxu1 }
 0xb08   :  { %v819_v29 = vrot.slane %v805_v25, %v2470_v12  ;;  %v823_v30 = vrot.slane %v812_v26, %v2476_v15 }
 0xb0a   :  { %v827_v31 = vrot.slane %v819_v29, %v2476_v15  ;;  %v830_v32 = vadd.f32 %v823_v30, %v2482_v21 }
 0xb0c   :  { %v831_v33 = vadd.f32 %v827_v31, %v2489_v24  ;;  %2265 = vtanh.f32 %v830_v32 }
 0xb0e   :  { %2267 = vtanh.f32 %v831_v33 }
 0xb16   :  { %v2266_v34 = vpop.eup %2265 }
 0xb17   :  { %v834_v13 = vmul.f32 %v2266_v34, %v2497_v28 }
 0xb18   :  { %v2268_v35 = vpop.eup %2267 }
 0xb19   :  { %v836_v36 = vsel %vm80_vm0, %v834_v13, 0.0  ;;  %v835_v37 = vmul.f32 %v2268_v35, %v2497_v28 }
 0xb1a   :  { %837 = vadd.xlane.f32.xlu0 %v836_v36 }
 0xb1b   :  { %v839_v39 = vsel %vm80_vm0, %v835_v37, 0.0 }
 0xb1c   :  { %840 = vadd.xlane.f32.xlu1 %v839_v39 }
 0xba7   :  { %v838_v43 = vpop.xlane.xlu0 %837 }
 0xba8   :  { %v842_v44 = vmul.f32 1.442695, %v838_v43 }
 0xba9   :  { %v841_v45 = vpop.xlane.xlu1 %840 }
 0xbaa   :  { %2269 = vpow2.f32 %v842_v44  ;;  %v844_v46 = vmul.f32 1.442695, %v841_v45 }
 0xbac   :  { %2271 = vpow2.f32 %v844_v46 }
 0xbb4   :  { %v2270_v47 = vpop.eup %2269 }
 0xbb5   :  { %v851_v49 = vrot.slane %v2270_v47, %v2503_v40  ;;  %v2085_v47 = vld [vmem:[%s3188_s0 + $0x4] sm:$0x3] }
 0xbb6   :  { %v2272_v48 = vpop.eup %2271 }
 0xbb7   :  { %v855_v53 = vrot.slane %v2272_v48, %v2503_v40 }
 0xbb9   :  { %v856_v54 = vsel %vm200_vm1, %v855_v53, %v851_v49 }
 0xbba   :  { %v858_v56 = vsel %vm42_vm2, %v856_v54, 0.0 }
 0xbbb   :  { %v859_v57 = vsel %vm204_vm3, %v858_v56, 0.0 }
 0xbbc   :  { %860 = vadd.xlane.f32.xlu0 %v859_v57 }
 0xc49   :  { %v861_v59 = vpop.xlane.xlu0 %860 }
 0xc4a   :  { %2273 = vrcp.f32 %v861_v59 }
 0xc54   :  { %v2274_v63 = vpop.eup %2273 }
 0xc55   :  { %v863_v6 = vmul.f32 %v2274_v63, %v858_v56 }
 0xc57   :  { %v874_v7 = vrot.slane %v863_v6, %v2524_v52  ;;  %v867_v8 = vrot.slane %v863_v6, %v2476_v15 }
 0xc59   :  { %876 = vbcast.lane.b32.xlu1 %v874_v7, 256  ;;  %869 = vbcast.lane.b32.xlu0 %v867_v8, 256 }
 0xc5d   :  { %957 = vrot.lane.b32.xlu0 %v752_v9, %s2367_s22  ;;  %947 = vrot.lane.b32.xlu1 %v752_v9, %s2369_s27 }
 0xccb   :  { %v877_v11 = vpop.permute.xlu1 %876  ;;  %v870_v17 = vpop.permute.xlu0 %869 }
 0xccc   :  { %v879_v19 = vmul.f32 %v877_v11, %v2560_v61  ;;  %v878_v22 = vmul.f32 %v870_v17, %v2565_v62 }
 0xcce   :  { %v887_v14 = vsel %vm226_vm5, %v879_v19, 0.0  ;;  %v880_v25 = vsel %vm226_vm5, %v878_v22, 0.0 }
 0xccf   :  { %v888_v26 = vrot.slane %v887_v14, 4  ;;  %v881_v27 = vrot.slane %v880_v25, 4  ;;  %v948_v54 = vpop.permute.xlu1 %947  ;;  %v958_v9 = vpop.permute.xlu0 %957 }
 0xcd1   :  { %v889_v29 = vadd.f32 %v888_v26, %v887_v14  ;;  %v882_v30 = vadd.f32 %v881_v27, %v880_v25 }
 0xcd3   :  { %v890_v31 = vrot.slane %v889_v29, 2  ;;  %v883_v20 = vrot.slane %v882_v30, 2 }
 0xcd5   :  { %v891_v32 = vadd.f32 %v890_v31, %v889_v29  ;;  %v884_v33 = vadd.f32 %v883_v20, %v882_v30 }
 0xcd7   :  { %v892_v34 = vrot.slane %v891_v32, 1  ;;  %v885_v13 = vrot.slane %v884_v33, 1 }
 0xcd9   :  { %v893_v35 = vadd.f32 %v892_v34, %v891_v32  ;;  %v886_v36 = vadd.f32 %v885_v13, %v884_v33 }
 0xcdb   :  { %v895_v37 = vpack.c.bf16 %v893_v35, %v893_v35  ;;  %v894_v39 = vpack.c.bf16 %v886_v36, %v886_v36 }
 0xcdd   :  { %v899_v43 = vunpack.c.l.b16 %v895_v37  ;;  %v898_v44 = vunpack.c.l.b16 %v894_v39 }
 0xcdf   :  { %v900_v45 = vsel %vm200_vm1, %v899_v43, %v898_v44 }
 0xce0   :  { %v901_v46 = vpack.c.b16 %v900_v45, %v900_v45 }
 0xce2   :  { %2168 = vmatmul.mubr.msk.bf16.vlgmr.msra.gmra.mrb[8].mxu1 %vm226_vm5, %v901_v46 }
 0xce3   :  { %1336 = vmatpush1.bf16.msra.mxu1 %v2440_v1  ;;  %1367 = vmatprep.mubr.bf16.mxu1 %v2364_v2 }
 0xce4   :  { %1337 = vmatprep.subr.bf16.mxu1 %v2447_v3 }
 0xce7   :  { %1338 = vmatpush1.bf16.msra.mxu1 %v2453_v4 }
 0xce8   :  { %2183 = vmatprep.subr.bf16.mxu1 %v2366_v51 }
 0xdb5   :  { %v939_v48 = vpop.f32.mrb[8].mxu1 }
 0xdb6   :  { %v2710_v49 = vadd.f32 %v2085_v47, %v939_v48  ;;  %v2169_v53 = vpop.f32.mrb[9].mxu1 }
 0xdb7   :  { %v942_v56 = vpop.f32.mrb[10].mxu1 }
 0xdb8   :  { %v950_v57 = vadd.f32 %v948_v54, %v2710_v49  ;;  %v2170_v59 = vpop.f32.mrb[11].mxu1 }
 0xdba   :  { %v2088_v63 = vmul.f32 -1.442695, %v950_v57 }
 0xdbc   :  { %2275 = vpow2.f32 %v2088_v63 }
 0xdc6   :  { %v2276_v6 = vpop.eup %2275 }
 0xdc7   :  { %v954_v7 = vadd.f32 1.0, %v2276_v6 }
 0xdc9   :  { %2277 = vrcp.f32 %v954_v7 }
 0xdd3   :  { %v2278_v8 = vpop.eup %2277 }
 0xdd4   :  { %v960_v11 = vmul.f32 %v2278_v8, %v958_v9  ;;  %v967_v14 = vsub.f32 1.0, %v2278_v8  ;;  %v973_v26 = vmul.f32 %v2278_v8, %v2656_v5 }
 0xdd6   :  { %962 = vrot.lane.b32.xlu1 %v960_v11, %s2370_s30 }
 0xe48   :  { %v963_v17 = vpop.permute.xlu1 %962 }
 0xe49   :  { %v965_v19 = vadd.f32 %v963_v17, %v2710_v49 }
 0xe4b   :  { %2279 = vtanh.f32 %v965_v19 }
 0xe55   :  { %v2280_v22 = vpop.eup %2279 }
 0xe56   :  { %969 = vrot.lane.b32.xlu0 %v2280_v22, %s2369_s27 }
 0xec8   :  { %v970_v25 = vpop.permute.xlu0 %969 }
 0xec9   :  { %v972_v27 = vmul.f32 %v970_v25, %v967_v14 }
 0xecb   :  { %v2717_v29 = vadd.f32 %v973_v26, %v972_v27 }
 0xecd   :  { %v1016_v30 = vpack.c.bf16 %v2717_v29, %v2717_v29 }
 0xecf   :  { %1018 = vrot.lane.b32.xlu1 %v1016_v30, %s2369_s27 }
 0xf41   :  { %v1019_v31 = vpop.permute.xlu1 %1018 }
 0xf42   :  { %2090 = vmatmul.mubr.msk.bf16.vlgmr.msra.gmra.mrb[12].mxu0 %vm80_vm0, %v1019_v31 }
 0xf43   :  { %2172 = vmatpush3.bf16.msra.mxu0 %v2520_v50  ;;  %2179 = vmatprep.mubr.msk.bf16.mxu0 %vm2368_vm4, %v2366_v51 }
 0xf44   :  { %2173 = vmatprep.subr.bf16.mxu0 %v2366_v51 }
 0xf47   :  { %2174 = vmatpush3.bf16.msra.mxu0 %v2531_v55 }
 0xf48   :  { %2175 = vmatprep.subr.bf16.mxu0 %v2366_v51 }
 0xf4b   :  { %2176 = vmatpush3.bf16.msra.mxu0 %v2540_v58 }
 0xf4c   :  { %2177 = vmatprep.subr.bf16.mxu0 %v2366_v51 }
 0xf4f   :  { %2178 = vmatpush3.bf16.msra.mxu0 %v2551_v60 }
 0xf50   :  { %1647 = vmatprep.subr.bf16.mxu0 %v2435_v0 }
0x1015   :  { %v1057_v20 = vpop.f32.mrb[12].mxu0 }
0x1016   :  { %v1116_v32 = vrot.slane %v1057_v20, %v2470_v12  ;;  %v2734_v33 = vpop.f32.mrb[13].mxu0  ;;  %v1064_v30 = vadd.f32 %v1057_v20, %v2571_v16 }
0x1017   :  { %v1061_v34 = vpop.f32.mrb[14].mxu0 }
0x1018   :  { %v1117_v13 = vcombine.high %v1116_v32, %v1116_v32  ;;  %v1124_v35 = vrot.slane %v1116_v32, %v2470_v12  ;;  %v1062_v36 = vpop.f32.mrb[15].mxu0 }
0x101a   :  { %v1131_v37 = vrot.slane %v1117_v13, %v2470_v12  ;;  %v1135_v39 = vrot.slane %v1124_v35, %v2476_v15 }
0x101c   :  { %v1139_v43 = vrot.slane %v1131_v37, %v2476_v15  ;;  %v1142_v44 = vadd.f32 %v1135_v39, %v2482_v21 }
0x101e   :  { %v1143_v0 = vadd.f32 %v1139_v43, %v2489_v24  ;;  %2281 = vtanh.f32 %v1142_v44 }
0x1020   :  { %2283 = vtanh.f32 %v1143_v0 }
0x1028   :  { %v2282_v45 = vpop.eup %2281 }
0x1029   :  { %v1146_v46 = vmul.f32 %v2282_v45, %v2497_v28 }
0x102a   :  { %v2284_v47 = vpop.eup %2283 }
0x102b   :  { %v1148_v48 = vsel %vm80_vm0, %v1146_v46, 0.0  ;;  %v1147_v53 = vmul.f32 %v2284_v47, %v2497_v28 }
0x102c   :  { %1149 = vadd.xlane.f32.xlu0 %v1148_v48 }
0x102d   :  { %v1151_v54 = vsel %vm80_vm0, %v1147_v53, 0.0 }
0x102e   :  { %1152 = vadd.xlane.f32.xlu1 %v1151_v54 }
0x10b9   :  { %v1150_v56 = vpop.xlane.xlu0 %1149 }
0x10ba   :  { %v1154_v57 = vmul.f32 1.442695, %v1150_v56 }
0x10bb   :  { %v1153_v59 = vpop.xlane.xlu1 %1152 }
0x10bc   :  { %2285 = vpow2.f32 %v1154_v57  ;;  %v1156_v63 = vmul.f32 1.442695, %v1153_v59 }
0x10be   :  { %2287 = vpow2.f32 %v1156_v63 }
0x10c6   :  { %v2286_v6 = vpop.eup %2285 }
0x10c7   :  { %v1163_v8 = vrot.slane %v2286_v6, %v2503_v40 }
0x10c8   :  { %v2288_v7 = vpop.eup %2287 }
0x10c9   :  { %v1167_v9 = vrot.slane %v2288_v7, %v2503_v40 }
0x10cb   :  { %v1168_v11 = vsel %vm200_vm1, %v1167_v9, %v1163_v8  ;;  %v2089_v8 = vld [vmem:[%s3188_s0 + $0x6] sm:$0x3] }
0x10cc   :  { %v1170_v17 = vsel %vm42_vm2, %v1168_v11, 0.0 }
0x10cd   :  { %v1171_v19 = vsel %vm204_vm3, %v1170_v17, 0.0 }
0x10ce   :  { %1172 = vadd.xlane.f32.xlu0 %v1171_v19 }
0x115b   :  { %v1173_v22 = vpop.xlane.xlu0 %1172 }
0x115c   :  { %2289 = vrcp.f32 %v1173_v22 }
0x1166   :  { %v2290_v14 = vpop.eup %2289 }
0x1167   :  { %v1175_v25 = vmul.f32 %v2290_v14, %v1170_v17 }
0x1169   :  { %v1186_v26 = vrot.slane %v1175_v25, %v2524_v52  ;;  %v1179_v27 = vrot.slane %v1175_v25, %v2476_v15 }
0x116b   :  { %1188 = vbcast.lane.b32.xlu1 %v1186_v26, 256  ;;  %1181 = vbcast.lane.b32.xlu0 %v1179_v27, 256 }
0x116f   :  { %1269 = vrot.lane.b32.xlu0 %v1064_v30, %s2367_s22  ;;  %1259 = vrot.lane.b32.xlu1 %v1064_v30, %s2369_s27 }
0x11dd   :  { %v1189_v31 = vpop.permute.xlu1 %1188  ;;  %v1182_v32 = vpop.permute.xlu0 %1181 }
0x11de   :  { %v1191_v34 = vmul.f32 %v1189_v31, %v2560_v61  ;;  %v1190_v13 = vmul.f32 %v1182_v32, %v2565_v62 }
0x11e0   :  { %v1199_v35 = vsel %vm226_vm5, %v1191_v34, 0.0  ;;  %v1192_v36 = vsel %vm226_vm5, %v1190_v13, 0.0 }
0x11e1   :  { %v1200_v37 = vrot.slane %v1199_v35, 4  ;;  %v1193_v39 = vrot.slane %v1192_v36, 4  ;;  %v1260_v19 = vpop.permute.xlu1 %1259  ;;  %v1270_v26 = vpop.permute.xlu0 %1269 }
0x11e3   :  { %v1201_v43 = vadd.f32 %v1200_v37, %v1199_v35  ;;  %v1194_v44 = vadd.f32 %v1193_v39, %v1192_v36 }
0x11e5   :  { %v1202_v0 = vrot.slane %v1201_v43, 2  ;;  %v1195_v20 = vrot.slane %v1194_v44, 2 }
0x11e7   :  { %v1203_v45 = vadd.f32 %v1202_v0, %v1201_v43  ;;  %v1196_v46 = vadd.f32 %v1195_v20, %v1194_v44 }
0x11e9   :  { %v1204_v47 = vrot.slane %v1203_v45, 1  ;;  %v1197_v48 = vrot.slane %v1196_v46, 1 }
0x11eb   :  { %v1205_v53 = vadd.f32 %v1204_v47, %v1203_v45  ;;  %v1198_v54 = vadd.f32 %v1197_v48, %v1196_v46 }
0x11ed   :  { %v1207_v56 = vpack.c.bf16 %v1205_v53, %v1205_v53  ;;  %v1206_v57 = vpack.c.bf16 %v1198_v54, %v1198_v54 }
0x11ef   :  { %v1211_v59 = vunpack.c.l.b16 %v1207_v56  ;;  %v1210_v63 = vunpack.c.l.b16 %v1206_v57 }
0x11f1   :  { %v1212_v6 = vsel %vm200_vm1, %v1211_v59, %v1210_v63 }
0x11f2   :  { %v1213_v7 = vpack.c.b16 %v1212_v6, %v1212_v6 }
0x11f4   :  { %2180 = vmatmul.mubr.msk.bf16.vlgmr.msra.gmra.mrb[16].mxu0 %vm226_vm5, %v1213_v7 }
0x11f5   :  { %1648 = vmatpush1.bf16.msra.mxu0 %v2440_v1  ;;  %1679 = vmatprep.mubr.bf16.mxu0 %v2364_v2 }
0x11f6   :  { %1649 = vmatprep.subr.bf16.mxu0 %v2447_v3 }
0x11f9   :  { %1650 = vmatpush1.bf16.msra.mxu0 %v2453_v4 }
0x11fa   :  { %2195 = vmatprep.subr.bf16.mxu0 %v2366_v51 }
0x12c7   :  { %v1251_v9 = vpop.f32.mrb[16].mxu0 }
0x12c8   :  { %v2771_v11 = vadd.f32 %v2089_v8, %v1251_v9  ;;  %v2181_v17 = vpop.f32.mrb[17].mxu0 }
0x12c9   :  { %v1254_v22 = vpop.f32.mrb[18].mxu0 }
0x12ca   :  { %v1262_v1 = vadd.f32 %v1260_v19, %v2771_v11  ;;  %v2182_v14 = vpop.f32.mrb[19].mxu0 }
0x12cc   :  { %v2092_v2 = vmul.f32 -1.442695, %v1262_v1 }
0x12ce   :  { %2291 = vpow2.f32 %v2092_v2 }
0x12d8   :  { %v2292_v3 = vpop.eup %2291 }
0x12d9   :  { %v1266_v25 = vadd.f32 1.0, %v2292_v3 }
0x12db   :  { %2293 = vrcp.f32 %v1266_v25 }
0x12e5   :  { %v2294_v4 = vpop.eup %2293 }
0x12e6   :  { %v1272_v27 = vmul.f32 %v2294_v4, %v1270_v26  ;;  %v1279_v34 = vsub.f32 1.0, %v2294_v4  ;;  %v1285_v35 = vmul.f32 %v2294_v4, %v2717_v29 }
0x12e8   :  { %1274 = vrot.lane.b32.xlu1 %v1272_v27, %s2370_s30 }
0x135a   :  { %v1275_v30 = vpop.permute.xlu1 %1274 }
0x135b   :  { %v1277_v31 = vadd.f32 %v1275_v30, %v2771_v11 }
0x135d   :  { %2295 = vtanh.f32 %v1277_v31 }
0x1367   :  { %v2296_v32 = vpop.eup %2295 }
0x1368   :  { %1281 = vrot.lane.b32.xlu0 %v2296_v32, %s2369_s27 }
0x13da   :  { %v1282_v13 = vpop.permute.xlu0 %1281 }
0x13db   :  { %v1284_v36 = vmul.f32 %v1282_v13, %v1279_v34 }
0x13dd   :  { %v2778_v37 = vadd.f32 %v1285_v35, %v1284_v36 }
0x13df   :  { %v1328_v39 = vpack.c.bf16 %v2778_v37, %v2778_v37 }
0x13e1   :  { %1330 = vrot.lane.b32.xlu1 %v1328_v39, %s2369_s27 }
0x1453   :  { %v1331_v43 = vpop.permute.xlu1 %1330 }
0x1454   :  { %2094 = vmatmul.mubr.msk.bf16.vlgmr.msra.gmra.mrb[12].mxu1 %vm80_vm0, %v1331_v43 }
0x1455   :  { %2184 = vmatpush3.bf16.msra.mxu1 %v2520_v50  ;;  %2191 = vmatprep.mubr.msk.bf16.mxu1 %vm2368_vm4, %v2366_v51 }
0x1456   :  { %2185 = vmatprep.subr.bf16.mxu1 %v2366_v51 }
0x1459   :  { %2186 = vmatpush3.bf16.msra.mxu1 %v2531_v55 }
0x145a   :  { %2187 = vmatprep.subr.bf16.mxu1 %v2366_v51 }
0x145d   :  { %2188 = vmatpush3.bf16.msra.mxu1 %v2540_v58 }
0x145e   :  { %2189 = vmatprep.subr.bf16.mxu1 %v2366_v51 }
0x1461   :  { %2190 = vmatpush3.bf16.msra.mxu1 %v2551_v60 }
0x1462   :  { %2207 = vmatprep.subr.bf16.mxu1 %v2366_v51 }
0x1527   :  { %v1369_v44 = vpop.f32.mrb[12].mxu1 }
0x1528   :  { %v1428_v50 = vrot.slane %v1369_v44, %v2470_v12  ;;  %v2795_v0 = vpop.f32.mrb[13].mxu1  ;;  %v1376_v27 = vadd.f32 %v1369_v44, %v2571_v16 }
0x1529   :  { %v1373_v20 = vpop.f32.mrb[14].mxu1 }
0x152a   :  { %v1429_v45 = vcombine.high %v1428_v50, %v1428_v50  ;;  %v1436_v46 = vrot.slane %v1428_v50, %v2470_v12  ;;  %v1374_v55 = vpop.f32.mrb[15].mxu1 }
0x152c   :  { %v1443_v47 = vrot.slane %v1429_v45, %v2470_v12  ;;  %v1447_v58 = vrot.slane %v1436_v46, %v2476_v15 }
0x152e   :  { %v1451_v48 = vrot.slane %v1443_v47, %v2476_v15  ;;  %v1454_v60 = vadd.f32 %v1447_v58, %v2482_v21 }
0x1530   :  { %v1455_v53 = vadd.f32 %v1451_v48, %v2489_v24  ;;  %2297 = vtanh.f32 %v1454_v60 }
0x1532   :  { %2299 = vtanh.f32 %v1455_v53 }
0x153a   :  { %v2298_v54 = vpop.eup %2297 }
0x153b   :  { %v1458_v56 = vmul.f32 %v2298_v54, %v2497_v28 }
0x153c   :  { %v2300_v57 = vpop.eup %2299 }
0x153d   :  { %v1460_v59 = vsel %vm80_vm0, %v1458_v56, 0.0  ;;  %v1459_v63 = vmul.f32 %v2300_v57, %v2497_v28  ;;  %v2329_v57 = vld [vmem:[%s3193_s5 + $0x4] ss:$8 sps:$4 sm:$0xff]  }
0x153e   :  { %1461 = vadd.xlane.f32.xlu0 %v1460_v59  ;;  %v2330_v59 = vld [vmem:[%s3193_s5 + $0x14] ss:$8 sps:$4 sm:$0xff]  }
0x153f   :  { %v1463_v6 = vsel %vm80_vm0, %v1459_v63, 0.0  ;;  %v2093_v63 = vld [vmem:[%s3188_s0 + $0x8] sm:$0x3] }
0x1540   :  { %1464 = vadd.xlane.f32.xlu1 %v1463_v6 }
0x15cb   :  { %v1462_v7 = vpop.xlane.xlu0 %1461 }
0x15cc   :  { %v1466_v8 = vmul.f32 1.442695, %v1462_v7 }
0x15cd   :  { %v1465_v9 = vpop.xlane.xlu1 %1464 }
0x15ce   :  { %2301 = vpow2.f32 %v1466_v8  ;;  %v1468_v21 = vmul.f32 1.442695, %v1465_v9 }
0x15d0   :  { %2303 = vpow2.f32 %v1468_v21 }
0x15d8   :  { %v2302_v24 = vpop.eup %2301 }
0x15d9   :  { %v1475_v19 = vrot.slane %v2302_v24, %v2503_v40 }
0x15da   :  { %v2304_v17 = vpop.eup %2303 }
0x15db   :  { %v1479_v22 = vrot.slane %v2304_v17, %v2503_v40 }
0x15dd   :  { %v1480_v1 = vsel %vm200_vm1, %v1479_v22, %v1475_v19 }
0x15de   :  { %v1482_v28 = vsel %vm42_vm2, %v1480_v1, 0.0 }
0x15df   :  { %v1483_v14 = vsel %vm204_vm3, %v1482_v28, 0.0 }
0x15e0   :  { %1484 = vadd.xlane.f32.xlu0 %v1483_v14 }
0x166d   :  { %v1485_v2 = vpop.xlane.xlu0 %1484 }
0x166e   :  { %2305 = vrcp.f32 %v1485_v2 }
0x1678   :  { %v2306_v3 = vpop.eup %2305 }
0x1679   :  { %v1487_v25 = vmul.f32 %v2306_v3, %v1482_v28 }
0x167b   :  { %v1498_v4 = vrot.slane %v1487_v25, %v2524_v52  ;;  %v1491_v26 = vrot.slane %v1487_v25, %v2476_v15 }
0x167d   :  { %1500 = vbcast.lane.b32.xlu1 %v1498_v4, 256  ;;  %1493 = vbcast.lane.b32.xlu0 %v1491_v26, 256 }
0x1681   :  { %1581 = vrot.lane.b32.xlu0 %v1376_v27, %s2367_s22  ;;  %1571 = vrot.lane.b32.xlu1 %v1376_v27, %s2369_s27 }
0x16ef   :  { %v1501_v30 = vpop.permute.xlu1 %1500  ;;  %v1494_v31 = vpop.permute.xlu0 %1493 }
0x16f0   :  { %v1503_v32 = vmul.f32 %v1501_v30, %v2560_v61  ;;  %v1502_v34 = vmul.f32 %v1494_v31, %v2565_v62 }
0x16f2   :  { %v1511_v13 = vsel %vm226_vm5, %v1503_v32, 0.0  ;;  %v1504_v35 = vsel %vm226_vm5, %v1502_v34, 0.0 }
0x16f3   :  { %v1512_v36 = vrot.slane %v1511_v13, 4  ;;  %v1505_v39 = vrot.slane %v1504_v35, 4  ;;  %v1572_v9 = vpop.permute.xlu1 %1571  ;;  %v1582_v14 = vpop.permute.xlu0 %1581 }
0x16f5   :  { %v1513_v43 = vadd.f32 %v1512_v36, %v1511_v13  ;;  %v1506_v50 = vadd.f32 %v1505_v39, %v1504_v35  ;;  %v2331_v35 = vld [vmem:[%s3194_s6] sm:$0xff]   ;;  %v2332_v36 = vld [vmem:[%s3194_s6 + $0x8] sm:$0xff]   ;;  %v2333_v39 = vld [vmem:[%s3194_s6 + $0x10] sm:$0xff]  }
0x16f7   :  { %v1514_v20 = vrot.slane %v1513_v43, 2  ;;  %v1507_v44 = vrot.slane %v1506_v50, 2 }
0x16f9   :  { %v1515_v45 = vadd.f32 %v1514_v20, %v1513_v43  ;;  %v1508_v46 = vadd.f32 %v1507_v44, %v1506_v50  ;;  %v2334_v43 = vld [vmem:[%s3194_s6 + $0x18] sm:$0xff]  }
0x16fb   :  { %v1516_v55 = vrot.slane %v1515_v45, 1  ;;  %v1509_v47 = vrot.slane %v1508_v46, 1 }
0x16fd   :  { %v1517_v58 = vadd.f32 %v1516_v55, %v1515_v45  ;;  %v1510_v48 = vadd.f32 %v1509_v47, %v1508_v46 }
0x16ff   :  { %v1519_v60 = vpack.c.bf16 %v1517_v58, %v1517_v58  ;;  %v1518_v61 = vpack.c.bf16 %v1510_v48, %v1510_v48 }
0x1701   :  { %v1523_v53 = vunpack.c.l.b16 %v1519_v60  ;;  %v1522_v62 = vunpack.c.l.b16 %v1518_v61  ;;  %v2335_v60 = vld [vmem:[%s3191_s3] sm:$0xff] }
0x1703   :  { %v1524_v54 = vsel %vm200_vm1, %v1523_v53, %v1522_v62  ;;  %v2336_v53 = vld [vmem:[%s3191_s3 + $0x8] sm:$0xff] }
0x1704   :  { %v1525_v56 = vpack.c.b16 %v1524_v54, %v1524_v54 }
0x1706   :  { %2192 = vmatmul.mubr.msk.bf16.vlgmr.msra.gmra.mrb[16].mxu1 %vm226_vm5, %v1525_v56  ;;  %v2337_v56 = vld [vmem:[%s3195_s7] ss:$0 sm:$0xff] }
0x1707   :  { %2208 = vmatpush3.bf16.msra.mxu1 %v2329_v57  ;;  %2211 = vmatprep.mubr.msk.bf16.mxu1 %vm2368_vm4, %v2366_v51 }
0x1708   :  { %2209 = vmatprep.subr.bf16.mxu1 %v2366_v51 }
0x170b   :  { %2210 = vmatpush3.bf16.msra.mxu1 %v2330_v59 }
0x17d9   :  { %v1563_v6 = vpop.f32.mrb[16].mxu1 }
0x17da   :  { %v2836_v7 = vadd.f32 %v2093_v63, %v1563_v6  ;;  %v2193_v8 = vpop.f32.mrb[17].mxu1 }
0x17db   :  { %v1566_v21 = vpop.f32.mrb[18].mxu1 }
0x17dc   :  { %v1574_v24 = vadd.f32 %v1572_v9, %v2836_v7  ;;  %v2194_v17 = vpop.f32.mrb[19].mxu1 }
0x17de   :  { %v2096_v19 = vmul.f32 -1.442695, %v1574_v24 }
0x17e0   :  { %2307 = vpow2.f32 %v2096_v19 }
0x17ea   :  { %v2308_v22 = vpop.eup %2307 }
0x17eb   :  { %v1578_v1 = vadd.f32 1.0, %v2308_v22 }
0x17ed   :  { %2309 = vrcp.f32 %v1578_v1 }
0x17f7   :  { %v2310_v28 = vpop.eup %2309 }
0x17f8   :  { %v1584_v2 = vmul.f32 %v2310_v28, %v1582_v14  ;;  %v1591_v26 = vsub.f32 1.0, %v2310_v28  ;;  %v1597_v30 = vmul.f32 %v2310_v28, %v2778_v37 }
0x17fa   :  { %1586 = vrot.lane.b32.xlu1 %v1584_v2, %s2370_s30 }
0x186c   :  { %v1587_v3 = vpop.permute.xlu1 %1586 }
0x186d   :  { %v1589_v25 = vadd.f32 %v1587_v3, %v2836_v7 }
0x186f   :  { %2311 = vtanh.f32 %v1589_v25 }
0x1879   :  { %v2312_v4 = vpop.eup %2311 }
0x187a   :  { %1593 = vrot.lane.b32.xlu0 %v2312_v4, %s2369_s27 }
0x18ec   :  { %v1594_v27 = vpop.permute.xlu0 %1593 }
0x18ed   :  { %v1596_v31 = vmul.f32 %v1594_v27, %v1591_v26 }
0x18ef   :  { %v2843_v32 = vadd.f32 %v1597_v30, %v1596_v31 }
0x18f1   :  { %v1640_v34 = vpack.c.bf16 %v2843_v32, %v2843_v32 }
0x18f3   :  { %1642 = vrot.lane.b32.xlu1 %v1640_v34, %s2369_s27  ;;  %v2338_v34 = vld [vmem:[%s3189_s1 + $0x8] sm:$0xff] }
0x1965   :  { %v1643_v13 = vpop.permute.xlu1 %1642 }
0x1966   :  { %2098 = vmatmul.mubr.msk.bf16.vlgmr.msra.gmra.mrb[20].mxu0 %vm80_vm0, %v1643_v13 }
0x1967   :  { %2196 = vmatpush3.bf16.msra.mxu0 %v2331_v35  ;;  %2203 = vmatprep.mubr.msk.bf16.mxu0 %vm2368_vm4, %v2366_v51 }
0x1968   :  { %2197 = vmatprep.subr.bf16.mxu0 %v2366_v51 }
0x196b   :  { %2198 = vmatpush3.bf16.msra.mxu0 %v2332_v36 }
0x196c   :  { %2199 = vmatprep.subr.bf16.mxu0 %v2366_v51 }
0x196f   :  { %2200 = vmatpush3.bf16.msra.mxu0 %v2333_v39 }
0x1970   :  { %2201 = vmatprep.subr.bf16.mxu0 %v2366_v51 }
0x1973   :  { %2202 = vmatpush3.bf16.msra.mxu0 %v2334_v43 }
0x1a39   :  { %v1681_v50 = vpop.f32.mrb[20].mxu0 }
0x1a3a   :  { %v1740_v20 = vrot.slane %v1681_v50, %v2470_v12  ;;  %v2867_v44 = vpop.f32.mrb[21].mxu0 }
0x1a3b   :  { %v1685_v45 = vpop.f32.mrb[22].mxu0 }
0x1a3c   :  { %v1741_v46 = vcombine.high %v1740_v20, %v1740_v20  ;;  %v1748_v55 = vrot.slane %v1740_v20, %v2470_v12  ;;  %v1686_v47 = vpop.f32.mrb[23].mxu0 }
0x1a3e   :  { %v1755_v58 = vrot.slane %v1741_v46, %v2470_v12  ;;  %v1759_v48 = vrot.slane %v1748_v55, %v2476_v15 }
0x1a40   :  { %v1763_v51 = vrot.slane %v1755_v58, %v2476_v15  ;;  %v1766_v61 = vadd.f32 %v2335_v60, %v1759_v48 }
0x1a42   :  { %v1767_v62 = vadd.f32 %v2336_v53, %v1763_v51  ;;  %2313 = vtanh.f32 %v1766_v61 }
0x1a44   :  { %2315 = vtanh.f32 %v1767_v62 }
0x1a4c   :  { %v2314_v54 = vpop.eup %2313 }
0x1a4d   :  { %v1770_v57 = vmul.f32 %v2337_v56, %v2314_v54 }
0x1a4e   :  { %v2316_v59 = vpop.eup %2315 }
0x1a4f   :  { %v1772_v63 = vsel %vm80_vm0, %v1770_v57, 0.0  ;;  %v1771_v6 = vmul.f32 %v2337_v56, %v2316_v59  ;;  %v2097_v59 = vld [vmem:[%s3188_s0 + $0xa] sm:$0x3] }
0x1a50   :  { %1773 = vadd.xlane.f32.xlu0 %v1772_v63 }
0x1a51   :  { %v1775_v8 = vsel %vm80_vm0, %v1771_v6, 0.0 }
0x1a52   :  { %1776 = vadd.xlane.f32.xlu1 %v1775_v8 }
0x1add   :  { %v1774_v9 = vpop.xlane.xlu0 %1773 }
0x1ade   :  { %v1778_v21 = vmul.f32 1.442695, %v1774_v9 }
0x1adf   :  { %v1777_v24 = vpop.xlane.xlu1 %1776 }
0x1ae0   :  { %2317 = vpow2.f32 %v1778_v21  ;;  %v1780_v17 = vmul.f32 1.442695, %v1777_v24 }
0x1ae2   :  { %2319 = vpow2.f32 %v1780_v17 }
0x1aea   :  { %v2318_v19 = vpop.eup %2317 }
0x1aeb   :  { %v1787_v1 = vrot.slane %v2318_v19, %v2503_v40 }
0x1aec   :  { %v2320_v22 = vpop.eup %2319 }
0x1aed   :  { %v1791_v28 = vrot.slane %v2320_v22, %v2503_v40  ;;  %v1688_v40 = vadd.f32 %v1681_v50, %v2571_v16 }
0x1aef   :  { %v1792_v14 = vsel %vm200_vm1, %v1791_v28, %v1787_v1 }
0x1af0   :  { %v1794_v2 = vsel %vm42_vm2, %v1792_v14, 0.0 }
0x1af1   :  { %v1795_v3 = vsel %vm204_vm3, %v1794_v2, 0.0 }
0x1af2   :  { %1796 = vadd.xlane.f32.xlu0 %v1795_v3 }
0x1b7f   :  { %v1797_v25 = vpop.xlane.xlu0 %1796 }
0x1b80   :  { %2321 = vrcp.f32 %v1797_v25 }
0x1b8a   :  { %v2322_v4 = vpop.eup %2321 }
0x1b8b   :  { %v1799_v26 = vmul.f32 %v2322_v4, %v1794_v2 }
0x1b8d   :  { %v1810_v27 = vrot.slane %v1799_v26, %v2524_v52  ;;  %v1803_v30 = vrot.slane %v1799_v26, %v2476_v15  ;;  %v2339_v52 = vld [vmem:[%s3189_s1] sm:$0xff]  ;;  %v2918_v26 = vrot.slane %v2595_v10, %v2470_v12  ;;  %s2371_s1 = smov [#allocation2]  }
0x1b8e   :  { %s2056_s18 = sshll.u32 %s2371_s1, 4  ;;  %s2057_s18 = int_to_ptr.vmem [resolvable:$true] %s2056_s18 }
0x1b8f   :  { %1812 = vbcast.lane.b32.xlu1 %v1810_v27, 256  ;;  %1805 = vbcast.lane.b32.xlu0 %v1803_v30, 256  ;;  %v365_v27 = vrot.slane %v2918_v26, %v2470_v12  ;;  %p2345_p1 = scmp.lt.s32.totalorder %s2057_s18, %s2057_s18 }
0x1b91   :  { %v376_v30 = vrot.slane %v365_v27, %v2476_v15 }
0x1b93   :  { %1893 = vrot.lane.b32.xlu0 %v1688_v40, %s2367_s22  ;;  %1883 = vrot.lane.b32.xlu1 %v1688_v40, %s2369_s27 }
0x1c01   :  { %v1813_v42 = vpop.permute.xlu1 %1812  ;;  %v1806_v31 = vpop.permute.xlu0 %1805 }
0x1c02   :  { %v1815_v13 = vmul.f32 %v2338_v34, %v1813_v42  ;;  %v1814_v35 = vmul.f32 %v2339_v52, %v1806_v31 }
0x1c04   :  { %v1823_v36 = vsel %vm226_vm5, %v1815_v13, 0.0  ;;  %v1816_v16 = vsel %vm226_vm5, %v1814_v35, 0.0 }
0x1c05   :  { %v1824_v39 = vrot.slane %v1823_v36, 4  ;;  %v1817_v43 = vrot.slane %v1816_v16, 4  ;;  %v1884_v9 = vpop.permute.xlu1 %1883  ;;  %v1894_v14 = vpop.permute.xlu0 %1893 }
0x1c07   :  { %v1825_v50 = vadd.f32 %v1824_v39, %v1823_v36  ;;  %v1818_v20 = vadd.f32 %v1817_v43, %v1816_v16 }
0x1c09   :  { %v1826_v45 = vrot.slane %v1825_v50, 2  ;;  %v1819_v46 = vrot.slane %v1818_v20, 2 }
0x1c0b   :  { %v1827_v55 = vadd.f32 %v1826_v45, %v1825_v50  ;;  %v1820_v47 = vadd.f32 %v1819_v46, %v1818_v20 }
0x1c0d   :  { %v1828_v58 = vrot.slane %v1827_v55, 1  ;;  %v1821_v48 = vrot.slane %v1820_v47, 1 }
0x1c0f   :  { %v1829_v51 = vadd.f32 %v1828_v58, %v1827_v55  ;;  %v1822_v60 = vadd.f32 %v1821_v48, %v1820_v47  ;;  %v2962_v55 = vrot.slane %v2717_v29, %v2470_v12 }
0x1c11   :  { %v1831_v61 = vpack.c.bf16 %v1829_v51, %v1829_v51  ;;  %v1830_v53 = vpack.c.bf16 %v1822_v60, %v1822_v60 }
0x1c13   :  { %v1835_v62 = vunpack.c.l.b16 %v1831_v61  ;;  %v1834_v54 = vunpack.c.l.b16 %v1830_v53 }
0x1c15   :  { %v1836_v56 = vsel %vm200_vm1, %v1835_v62, %v1834_v54  ;;  %v2987_v62 = vrot.slane %v2778_v37, %v2470_v12 }
0x1c16   :  { %v1837_v57 = vpack.c.b16 %v1836_v56, %v1836_v56 }
0x1c17   :  { %v1295_v37 = vcombine.high %v2987_v62, %v2987_v62 }
0x1c18   :  { %2204 = vmatmul.mubr.msk.bf16.vlgmr.msra.gmra.mrb[24].mxu0 %vm226_vm5, %v1837_v57 }
0x1ceb   :  { %v1875_v63 = vpop.f32.mrb[24].mxu0 }
0x1cec   :  { %v2908_v6 = vadd.f32 %v2097_v59, %v1875_v63  ;;  %v2205_v8 = vpop.f32.mrb[25].mxu0 }
0x1ced   :  { %v1878_v21 = vpop.f32.mrb[26].mxu0 }
0x1cee   :  { %v1886_v24 = vadd.f32 %v1884_v9, %v2908_v6  ;;  %v2206_v17 = vpop.f32.mrb[27].mxu0  ;;  %v1309_v21 = vrot.slane %v1295_v37, %v2470_v12 }
0x1cf0   :  { %v2100_v19 = vmul.f32 -1.442695, %v1886_v24  ;;  %v3010_v24 = vrot.slane %v2843_v32, %v2470_v12 }
0x1cf2   :  { %2323 = vpow2.f32 %v2100_v19 }
0x1cfc   :  { %v2324_v22 = vpop.eup %2323 }
0x1cfd   :  { %v1890_v1 = vadd.f32 1.0, %v2324_v22 }
0x1cff   :  { %2325 = vrcp.f32 %v1890_v1 }
0x1d09   :  { %v2326_v28 = vpop.eup %2325 }
0x1d0a   :  { %v1896_v2 = vmul.f32 %v2326_v28, %v1894_v14  ;;  %v1903_v40 = vsub.f32 1.0, %v2326_v28 }
0x1d0c   :  { %1898 = vrot.lane.b32.xlu1 %v1896_v2, %s2370_s30 }
0x1d7e   :  { %v1899_v3 = vpop.permute.xlu1 %1898 }
0x1d7f   :  { %v1901_v25 = vadd.f32 %v1899_v3, %v2908_v6 }
0x1d81   :  { %2327 = vtanh.f32 %v1901_v25 }
0x1d8b   :  { %v2328_v4 = vpop.eup %2327 }
0x1d8c   :  { %1905 = vrot.lane.b32.xlu0 %v2328_v4, %s2369_s27 }
0x1d90   :  { %442 = vrot.lane.b32.xlu0 %v2612_v18, %s2369_s27  ;;  %v1909_v18 = vmul.f32 %v2326_v28, %v2843_v32  ;;  %v1317_v28 = vrot.slane %v1309_v21, %v2476_v15  ;;  %v1607_v32 = vcombine.high %v3010_v24, %v3010_v24 }
0x1d92   :  { %v1621_v25 = vrot.slane %v1607_v32, %v2470_v12 }
0x1d94   :  { %1066 = vrot.lane.b32.xlu0 %v2734_v33, %s2369_s27  ;;  %v1629_v4 = vrot.slane %v1621_v25, %v2476_v15 }
0x1d98   :  { %1690 = vrot.lane.b32.xlu0 %v2867_v44, %s2369_s27  ;;  %v2936_v44 = vrot.slane %v2656_v5, %v2470_v12 }
0x1d9a   :  { %v671_v43 = vcombine.high %v2936_v44, %v2936_v44 }
0x1d9c   :  { %381 = vrot.lane.b32.xlu0 %v376_v30, %s2369_s27  ;;  %v685_v20 = vrot.slane %v671_v43, %v2470_v12 }
0x1dfe   :  { %v1906_v42 = vpop.permute.xlu0 %1905 }
0x1dff   :  { %v1908_v31 = vmul.f32 %v1906_v42, %v1903_v40 }
0x1e01   :  { %v2929_v10 = vadd.f32 %v1909_v18, %v1908_v31 }
0x1e02   :  { %v443_v34 = vpop.permute.xlu0 %442 }
0x1e03   :  { %v445_v33 = vadd.f32 %v443_v34, %v2587_v38  ;;  %v1950_v13 = vpack.c.bf16 %v2929_v10, %v2929_v10 }
0x1e05   :  { %v453_v52 = vrot.slane %v445_v33, %v2470_v12  ;;  %1952 = vrot.lane.b32.xlu1 %v1950_v13, %s2369_s27 }
0x1e06   :  { %v1067_v35 = vpop.permute.xlu0 %1066 }
0x1e07   :  { %v454_v36 = vcombine.high %v453_v52, %v453_v52  ;;  %v461_v16 = vrot.slane %v453_v52, %v2470_v12  ;;  %v1069_v47 = vadd.f32 %v1067_v35, %v2710_v49  ;;  %v983_v49 = vcombine.high %v2962_v55, %v2962_v55 }
0x1e09   :  { %754 = vrot.lane.b32.xlu1 %v2673_v23, %s2369_s27  ;;  %v472_v38 = vrot.slane %v461_v16, %v2476_v15  ;;  %v468_v39 = vrot.slane %v454_v36, %v2470_v12  ;;  %v693_v23 = vrot.slane %v685_v20, %v2476_v15  ;;  %v2974_v60 = vrot.slane %v1069_v47, %v2470_v12 }
0x1e0a   :  { %v1691_v5 = vpop.permute.xlu0 %1690  ;;  %v997_v59 = vrot.slane %v983_v49, %v2470_v12  ;;  %v990_v47 = vrot.slane %v2962_v55, %v2470_v12 }
0x1e0b   :  { %477 = vrot.lane.b32.xlu0 %v472_v38, %s2367_s22  ;;  %v476_v50 = vrot.slane %v468_v39, %v2476_v15  ;;  %v1078_v54 = vcombine.high %v2974_v60, %v2974_v60  ;;  %v1693_v17 = vadd.f32 %v1691_v5, %v2836_v7  ;;  %v3027_v7 = vrot.slane %v2929_v10, %v2470_v12 }
0x1e0c   :  { %v358_v38 = vcombine.high %v2918_v26, %v2918_v26 }
0x1e0d   :  { %1378 = vrot.lane.b32.xlu1 %v2795_v0, %s2369_s27  ;;  %v1092_v9 = vrot.slane %v1078_v54, %v2470_v12  ;;  %v3018_v1 = vrot.slane %v1693_v17, %v2470_v12  ;;  %v1919_v30 = vcombine.high %v3027_v7, %v3027_v7 }
0x1e0e   :  { %v382_v45 = vpop.permute.xlu0 %381  ;;  %v372_v39 = vrot.slane %v358_v38, %v2470_v12 }
0x1e0f   :  { %388 = vst.msk [vmem:[%s3197_s9] sm:$0x1] %vm387_vm6, %v382_v45  ;;  %479 = vrot.lane.b32.xlu0 %v476_v50, %s2367_s22  ;;  %v1100_v22 = vrot.slane %v1092_v9, %v2476_v15  ;;  %v1702_v2 = vcombine.high %v3018_v1, %v3018_v1  ;;  %v1933_v42 = vrot.slane %v1919_v30, %v2470_v12 }
0x1e10   :  { %v380_v45 = vrot.slane %v372_v39, %v2476_v15  ;;  %v1709_v49 = vrot.slane %v3018_v1, %v2470_v12 }
0x1e11   :  { %v1716_v27 = vrot.slane %v1702_v2, %v2470_v12  ;;  %v1941_v18 = vrot.slane %v1933_v42, %v2476_v15 }
0x1e13   :  { %696 = vrot.lane.b32.xlu0 %v693_v23, %s2369_s27  ;;  %v1724_v40 = vrot.slane %v1716_v27, %v2476_v15  ;;  %v678_v23 = vrot.slane %v2936_v44, %v2470_v12  ;;  %v1085_v44 = vrot.slane %v2974_v60, %v2470_v12 }
0x1e77   :  { %v1953_v46 = vpop.permute.xlu1 %1952 }
0x1e78   :  { %2212 = vmatmul.mubr.msk.bf16.vlgmr.msra.gmra.mrb[20].mxu1 %vm80_vm0, %v1953_v46  ;;  %v689_v46 = vrot.slane %v678_v23, %v2476_v15 }
0x1e7b   :  { %v755_v0 = vpop.permute.xlu1 %754 }
0x1e7c   :  { %v757_v58 = vadd.f32 %v755_v0, %v2649_v41 }
0x1e7d   :  { %v478_v48 = vpop.permute.xlu0 %477 }
0x1e7e   :  { %v2967_v51 = vrot.slane %v757_v58, %v2470_v12  ;;  %483 = vst.msk [vmem:[%s3198_s10] sm:$0x1] %vm387_vm6, %v478_v48  ;;  %v1001_v58 = vrot.slane %v990_v47, %v2476_v15  ;;  %v1302_v48 = vrot.slane %v2987_v62, %v2470_v12 }
0x1e7f   :  { %v1379_v61 = vpop.permute.xlu1 %1378 }
0x1e80   :  { %v766_v29 = vcombine.high %v2967_v51, %v2967_v51  ;;  %v1381_v56 = vadd.f32 %v1379_v61, %v2771_v11  ;;  %v1005_v11 = vrot.slane %v997_v59, %v2476_v15  ;;  %v773_v26 = vrot.slane %v2967_v51, %v2470_v12 }
0x1e81   :  { %v480_v41 = vpop.permute.xlu0 %479  ;;  %v1313_v55 = vrot.slane %v1302_v48, %v2476_v15 }
0x1e82   :  { %484 = vst.msk [vmem:[%s3198_s10 + $0x8] sm:$0x1] %vm387_vm6, %v480_v41  ;;  %v780_v53 = vrot.slane %v766_v29, %v2470_v12  ;;  %v3002_v8 = vrot.slane %v1381_v56, %v2470_v12  ;;  %v784_v0 = vrot.slane %v773_v26, %v2476_v15  ;;  %v1614_v29 = vrot.slane %v3010_v24, %v2470_v12 }
0x1e83   :  { %v1720_v41 = vrot.slane %v1709_v49, %v2476_v15 }
0x1e84   :  { %v788_v57 = vrot.slane %v780_v53, %v2476_v15  ;;  %v1390_v19 = vcombine.high %v3002_v8, %v3002_v8  ;;  %v1397_v51 = vrot.slane %v3002_v8, %v2470_v12  ;;  %v1625_v61 = vrot.slane %v1614_v29, %v2476_v15 }
0x1e85   :  { %v697_v63 = vpop.permute.xlu0 %696  ;;  %v1926_v53 = vrot.slane %v3027_v7, %v2470_v12 }
0x1e86   :  { %701 = vst.msk [vmem:[%s3197_s9 + $0x9] sm:$0x1] %vm387_vm6, %v697_v63  ;;  %791 = vrot.lane.b32.xlu0 %v788_v57, %s2367_s22  ;;  %v1404_v14 = vrot.slane %v1390_v19, %v2470_v12  ;;  %v1408_v60 = vrot.slane %v1397_v51, %v2476_v15 }
0x1e87   :  { %v1937_v62 = vrot.slane %v1926_v53, %v2476_v15 }
0x1e88   :  { %v1412_v3 = vrot.slane %v1404_v14, %v2476_v15 }
0x1e8a   :  { %1008 = vrot.lane.b32.xlu0 %v1005_v11, %s2369_s27 }
0x1e8e   :  { %1103 = vrot.lane.b32.xlu0 %v1100_v22, %s2367_s22 }
0x1e92   :  { %1320 = vrot.lane.b32.xlu0 %v1317_v28, %s2369_s27 }
0x1e96   :  { %1415 = vrot.lane.b32.xlu0 %v1412_v3, %s2367_s22 }
0x1e9a   :  { %1632 = vrot.lane.b32.xlu0 %v1629_v4, %s2369_s27 }
0x1e9e   :  { %1727 = vrot.lane.b32.xlu0 %v1724_v40, %s2367_s22 }
0x1ea2   :  { %1944 = vrot.lane.b32.xlu0 %v1941_v18, %s2369_s27 }
0x1ef8   :  { %v792_v31 = vpop.permute.xlu0 %791 }
0x1ef9   :  { %796 = vst.msk [vmem:[%s3198_s10 + $0x9] sm:$0x1] %vm387_vm6, %v792_v31 }
0x1efc   :  { %v1009_v34 = vpop.permute.xlu0 %1008 }
0x1efd   :  { %1013 = vst.msk [vmem:[%s3197_s9 + $0xa] sm:$0x1] %vm387_vm6, %v1009_v34 }
0x1f00   :  { %v1104_v33 = vpop.permute.xlu0 %1103 }
0x1f01   :  { %1108 = vst.msk [vmem:[%s3198_s10 + $0xa] sm:$0x1] %vm387_vm6, %v1104_v33 }
0x1f04   :  { %v1321_v13 = vpop.permute.xlu0 %1320 }
0x1f05   :  { %1325 = vst.msk [vmem:[%s3197_s9 + $0xb] sm:$0x1] %vm387_vm6, %v1321_v13 }
0x1f08   :  { %v1416_v52 = vpop.permute.xlu0 %1415 }
0x1f09   :  { %1420 = vst.msk [vmem:[%s3198_s10 + $0xb] sm:$0x1] %vm387_vm6, %v1416_v52 }
0x1f0c   :  { %v1633_v35 = vpop.permute.xlu0 %1632 }
0x1f0d   :  { %1637 = vst.msk [vmem:[%s3197_s9 + $0xc] sm:$0x1] %vm387_vm6, %v1633_v35 }
0x1f10   :  { %v1728_v36 = vpop.permute.xlu0 %1727 }
0x1f11   :  { %1732 = vst.msk [vmem:[%s3198_s10 + $0xc] sm:$0x1] %vm387_vm6, %v1728_v36 }
0x1f14   :  { %v1945_v16 = vpop.permute.xlu0 %1944 }
0x1f15   :  { %1949 = vst.msk [vmem:[%s3197_s9 + $0xd] sm:$0x1] %vm387_vm6, %v1945_v16 }
0x1f4b   :  { %v1991_v43 = vpop.f32.mrb[20].mxu1 }
0x1f4c   :  { %1998 = vrot.lane.b32.xlu1 %v1991_v43, %s2369_s27  ;;  %v2213_v5 = vpop.f32.mrb[21].mxu1 }
0x1f4d   :  { %v1994_v50 = vpop.f32.mrb[22].mxu1 }
0x1f4e   :  { %v2214_v20 = vpop.f32.mrb[23].mxu1 }
0x1f50   :  { %383 = vrot.lane.b32.xlu1 %v380_v45, %s2369_s27 }
0x1f54   :  { %2041 = vrot.lane.b32.xlu1 %v2929_v10, %s2369_s27  ;;  %v1096_v10 = vrot.slane %v1085_v44, %v2476_v15 }
0x1f58   :  { %694 = vrot.lane.b32.xlu1 %v689_v46, %s2369_s27 }
0x1f5c   :  { %789 = vrot.lane.b32.xlu1 %v784_v0, %s2367_s22 }
0x1f60   :  { %1006 = vrot.lane.b32.xlu1 %v1001_v58, %s2369_s27 }
0x1f64   :  { %1101 = vrot.lane.b32.xlu1 %v1096_v10, %s2367_s22 }
0x1f68   :  { %1318 = vrot.lane.b32.xlu1 %v1313_v55, %s2369_s27 }
0x1f6c   :  { %1413 = vrot.lane.b32.xlu1 %v1408_v60, %s2367_s22 }
0x1f70   :  { %1630 = vrot.lane.b32.xlu1 %v1625_v61, %s2369_s27 }
0x1f74   :  { %1725 = vrot.lane.b32.xlu1 %v1720_v41, %s2367_s22 }
0x1f78   :  { %1942 = vrot.lane.b32.xlu1 %v1937_v62, %s2369_s27  ;;  %s2340_s27 = scalar_lea.vmem %s2057_s18, 32 }
0x1f79   :  { %p2341_p0 = scmp.ne.s32.totalorder %s2057_s18, %s2340_s27  ;;  %p2346_p2 = scmp.lt.s32.totalorder %s2340_s27, %s2340_s27 }
0x1f7b   :  { %p2347_p3 = por %p2346_p2, %p2345_p1 }
0x1f7d   :  { %p2348_p4 = pnand %p2347_p3, %p2341_p0 }
0x1fbe   :  { %v1999_v54 = vpop.permute.xlu1 %1998 }
0x1fbf   :  { %v2001_v56 = vadd.f32 %v1999_v54, %v2908_v6 }
0x1fc1   :  { %v2009_v57 = vrot.slane %v2001_v56, %v2470_v12 }
0x1fc2   :  { %v384_v59 = vpop.permute.xlu1 %383 }
0x1fc3   :  { %v2010_v63 = vcombine.high %v2009_v57, %v2009_v57  ;;  %v2017_v37 = vrot.slane %v2009_v57, %v2470_v12  ;;  %389 = vst.msk [vmem:[%s3197_s9 + $0x8] sm:$0x1] %vm387_vm6, %v384_v59 }
0x1fc5   :  { %v2028_v8 = vrot.slane %v2017_v37, %v2476_v15  ;;  %v2024_v11 = vrot.slane %v2010_v63, %v2470_v12 }
0x1fc6   :  { %v2042_v6 = vpop.permute.xlu1 %2041 }
0x1fc7   :  { %2045 = vst.msk [vmem:[#allocation2] sm:$0x3] %vm2044_vm7, %v2042_v6  ;;  %2033 = vrot.lane.b32.xlu1 %v2028_v8, %s2367_s22  ;;  %v2032_v9 = vrot.slane %v2024_v11, %v2476_v15 }
0x1fc8   :  { %2351 = shalt.err (!%p2348_p4)
}
0x1fc9   :  { %s2352_s21 = scalar_lea.hbm %s3199_s11, 32 }
0x1fca   :  { %p2353_p5 = scmp.ne.s32.totalorder %s3199_s11, %s2352_s21  ;;  %p2356_p6 = scmp.lt.u32.totalorder %s2352_s21, %s3199_s11 }
0x1fcc   :  { %p2358_p7 = pnand %p2356_p6, %p2353_p5 }
0x1fce   :  { %2361 = shalt.err (!%p2358_p7)
}
0x1fcf   :  { %2059 = dma.vmem_to_hbm [thread:$0]  %s2057_s18, 32, %s3199_s11, [#allocation3]   ;;  %2035 = vrot.lane.b32.xlu0 %v2032_v9, %s2367_s22  ;;  %v695_v12 = vpop.permute.xlu1 %694 }
0x1fd0   :  { %700 = vst.msk [vmem:[%s3197_s9 + $0x1] sm:$0x1] %vm387_vm6, %v695_v12 }
0x1fd3   :  { %v790_v15 = vpop.permute.xlu1 %789 }
0x1fd4   :  { %795 = vst.msk [vmem:[%s3198_s10 + $0x1] sm:$0x1] %vm387_vm6, %v790_v15 }
0x1fd7   :  { %v1007_v21 = vpop.permute.xlu1 %1006 }
0x1fd8   :  { %1012 = vst.msk [vmem:[%s3197_s9 + $0x2] sm:$0x1] %vm387_vm6, %v1007_v21 }
0x1fdb   :  { %v1102_v24 = vpop.permute.xlu1 %1101 }
0x1fdc   :  { %1107 = vst.msk [vmem:[%s3198_s10 + $0x2] sm:$0x1] %vm387_vm6, %v1102_v24 }
0x1fdf   :  { %v1319_v17 = vpop.permute.xlu1 %1318 }
0x1fe0   :  { %1324 = vst.msk [vmem:[%s3197_s9 + $0x3] sm:$0x1] %vm387_vm6, %v1319_v17 }
0x1fe3   :  { %v1414_v19 = vpop.permute.xlu1 %1413 }
0x1fe4   :  { %1419 = vst.msk [vmem:[%s3198_s10 + $0x3] sm:$0x1] %vm387_vm6, %v1414_v19 }
0x1fe7   :  { %v1631_v22 = vpop.permute.xlu1 %1630 }
0x1fe8   :  { %1636 = vst.msk [vmem:[%s3197_s9 + $0x4] sm:$0x1] %vm387_vm6, %v1631_v22 }
0x1feb   :  { %v1726_v1 = vpop.permute.xlu1 %1725 }
0x1fec   :  { %1731 = vst.msk [vmem:[%s3198_s10 + $0x4] sm:$0x1] %vm387_vm6, %v1726_v1 }
0x1fef   :  { %v1943_v28 = vpop.permute.xlu1 %1942 }
0x1ff0   :  { %1948 = vst.msk [vmem:[%s3197_s9 + $0x5] sm:$0x1] %vm387_vm6, %v1943_v28 }
0x2039   :  { %v2034_v14 = vpop.permute.xlu1 %2033 }
0x203a   :  { %2039 = vst.msk [vmem:[%s3198_s10 + $0x5] sm:$0x1] %vm387_vm6, %v2034_v14 }
0x2041   :  { %v2036_v32 = vpop.permute.xlu0 %2035 }
0x2042   :  { %2040 = vst.msk [vmem:[%s3198_s10 + $0xd] sm:$0x1] %vm387_vm6, %v2036_v32 }
0x2043   :  { %2362 = dma.done.wait [#allocation3], 32  }
0x2044   :  { %2363 = vsyncadd [#allocation3], 4294967264 }
0x2045   :  { %2067 = vsyncpa [#allocation3], 1 }

</bundles_post_ra>
